<compile_context>
chip_gen: v6e
topology: v6e:2x2x1
jax: 0.10.0
libtpu: 0.0.40
codegen_flags: <defaults>
</compile_context>

<pallas_src>
import functools

import jax
import jax.numpy as jnp
from jax.experimental import pallas as pl
from jax.experimental.pallas import tpu as pltpu

LANE = 128


def _round_up(x, m):
    return (x + m - 1) // m * m


# ----------------------------------------------------------------------------
# Pallas kernel: LSTM recurrence (single invocation, in-kernel time loop)
# ----------------------------------------------------------------------------
def lstm_kernel(gx_ref, whh_ref, out_ref, h_out_ref, c_out_ref):
    """Recurrent part of the LSTM.

    gx_ref : (T, B, 4*Hp) f32  pre-computed x_t @ W_ih^T + (b_ih + b_hh)
    whh_ref: (Hp, 4*Hp) bf16/f32 recurrent weight, pre-transposed, gate order [i,f,g,o]
    out_ref: (T, B, Hp) f32    h_t for every timestep
    h_out_ref, c_out_ref: (B, Hp) f32 final hidden / cell state
    """
    T, B, G = gx_ref.shape
    Hp = G // 4

    whh = whh_ref[...]  # loaded once; resident across the whole recurrence

    def sigmoid(x):  # one EUP push per gate instead of exp + reciprocal chain
        return 0.5 * (jnp.tanh(0.5 * x) + 1.0)

    def step(t, carry):
        h_prev, c_prev = carry  # f32 (B, Hp), live in vregs
        gates = gx_ref[t] + jnp.dot(h_prev.astype(whh.dtype), whh,
                                    preferred_element_type=jnp.float32)
        # PyTorch gate order [i, f, g, o]; each slice is lane-aligned (Hp = 128)
        i_g = sigmoid(gates[:, 0 * Hp:1 * Hp])
        f_g = sigmoid(gates[:, 1 * Hp:2 * Hp])
        g_g = jnp.tanh(gates[:, 2 * Hp:3 * Hp])
        o_g = sigmoid(gates[:, 3 * Hp:4 * Hp])
        c_new = f_g * c_prev + i_g * g_g
        h_new = o_g * jnp.tanh(c_new)
        out_ref[t] = h_new.astype(out_ref.dtype)  # lane-dense (width 128) store
        return h_new, c_new

    h0 = jnp.zeros((B, Hp), jnp.float32)
    c0 = jnp.zeros((B, Hp), jnp.float32)
    h_n, c_n = jax.lax.fori_loop(0, T, step, (h0, c0), unroll=True)

    # Final-state stores happen exactly once, after the loop.
    h_out_ref[...] = h_n.astype(h_out_ref.dtype)
    c_out_ref[...] = c_n.astype(c_out_ref.dtype)


def lstm_pallas(gx, w_hh_t):
    """gx: (T, B, 4*Hp) f32 pre-activations; w_hh_t: (Hp, 4*Hp)."""
    T, B, G = gx.shape
    Hp = G // 4
    out, h_n, c_n = pl.pallas_call(
        lstm_kernel,
        out_shape=(
            jax.ShapeDtypeStruct((T, B, Hp), jnp.float32),  # all hidden states
            jax.ShapeDtypeStruct((B, Hp), jnp.float32),     # final hidden
            jax.ShapeDtypeStruct((B, Hp), jnp.float32),     # final cell
        ),
        grid_spec=pltpu.PrefetchScalarGridSpec(
            num_scalar_prefetch=0,
            grid=(1,),                                      # single invocation
            in_specs=[
                pl.BlockSpec((T, B, G), lambda i: (0, 0, 0)),  # gates_x, fully resident
                pl.BlockSpec((Hp, G), lambda i: (0, 0)),       # W_hh^T, loaded once
            ],
            out_specs=[
                pl.BlockSpec((T, B, Hp), lambda i: (0, 0, 0)),
                pl.BlockSpec((B, Hp), lambda i: (0, 0)),
                pl.BlockSpec((B, Hp), lambda i: (0, 0)),
            ],
        ),
        compiler_params=pltpu.CompilerParams(
            dimension_semantics=("arbitrary",)),  # sequential time recurrence
    )(gx, w_hh_t)
    return out, h_n, c_n


# ----------------------------------------------------------------------------
# Parameters (PyTorch-style init) and kernel-layout preparation
# ----------------------------------------------------------------------------
def init_encoder_params(key, input_size, hidden_size):
    H = hidden_size
    k_emb, k1, k2, k3, k4 = jax.random.split(key, 5)
    # nn.Embedding default: N(0, 1)
    embedding = jax.random.normal(k_emb, (input_size, H), dtype=jnp.float32)
    # nn.LSTM default: U(-1/sqrt(H), 1/sqrt(H)) for all weights / biases
    bound = 1.0 / jnp.sqrt(jnp.float32(H))
    w_ih = jax.random.uniform(k1, (4 * H, H), jnp.float32, -bound, bound)
    w_hh = jax.random.uniform(k2, (4 * H, H), jnp.float32, -bound, bound)
    b_ih = jax.random.uniform(k3, (4 * H,), jnp.float32, -bound, bound)
    b_hh = jax.random.uniform(k4, (4 * H,), jnp.float32, -bound, bound)
    return {"embedding": embedding, "w_ih": w_ih, "w_hh": w_hh,
            "b_ih": b_ih, "b_hh": b_hh}


def prepare_kernel_params(params, hidden_size, compute_dtype=jnp.bfloat16):
    """Pad H -> Hp (multiple of 128) per-gate and pre-transpose weights (done once)."""
    H = hidden_size
    Hp = _round_up(H, LANE)
    pad = Hp - H

    def pad_w(w):  # (4H, H) PyTorch layout -> (Hp, 4*Hp), per-gate lane-aligned
        w4 = w.reshape(4, H, H)                                # [i,f,g,o] blocks
        w4 = jnp.pad(w4, ((0, 0), (0, pad), (0, pad)))
        return jnp.transpose(w4, (2, 0, 1)).reshape(Hp, 4 * Hp)

    bias = (params["b_ih"] + params["b_hh"]).reshape(4, H)
    bias_p = jnp.pad(bias, ((0, 0), (0, pad))).reshape(1, 4 * Hp)

    return {
        "embedding": jnp.pad(params["embedding"], ((0, 0), (0, pad))).astype(compute_dtype),
        "w_ih_t": pad_w(params["w_ih"]).astype(compute_dtype),
        "w_hh_t": pad_w(params["w_hh"]).astype(compute_dtype),
        "bias": bias_p.astype(jnp.float32),
    }


def make_encoder_forward(hidden_size):
    H = hidden_size

    @jax.jit
    def forward(tokens, kparams):
        """tokens (B,T) int32 -> (output (B,T,H), (hidden (1,B,H), cell (1,B,H)))."""
        # Embedding gather directly in time-major layout: (T, B, Hp)
        emb_tm = jnp.take(kparams["embedding"], tokens.T, axis=0)
        # TODO(synk): nn.Dropout(p=0.2) is identity in eval mode; a training-mode
        # path would apply pltpu.prng_seed / prng_random_bits to the embeddings.
        # Hoisted input projection: one large matmul over all timesteps, f32 accum.
        gx = jnp.einsum("tbh,hg->tbg", emb_tm, kparams["w_ih_t"],
                        preferred_element_type=jnp.float32) + kparams["bias"]
        out_tbh, h_n, c_n = lstm_pallas(gx, kparams["w_hh_t"])
        output = jnp.transpose(out_tbh[:, :, :H], (1, 0, 2))   # (B, T, H) batch_first
        hidden = h_n[:, :H][None]                               # (1, B, H)
        cell = c_n[:, :H][None]                                 # (1, B, H)
        return output, (hidden, cell)

    return forward


# ----------------------------------------------------------------------------
# Pure-JAX f32 reference (lax.scan) for correctness checking
# ----------------------------------------------------------------------------
def encoder_forward_ref(tokens, params):
    emb = jnp.take(params["embedding"], tokens, axis=0)  # (B, T, H)
    B, T, H = emb.shape
    w_ih_t, w_hh_t = params["w_ih"].T, params["w_hh"].T
    b = params["b_ih"] + params["b_hh"]

    def step(carry, x_t):
        h, c = carry
        gates = x_t @ w_ih_t + h @ w_hh_t + b
        i = jax.nn.sigmoid(gates[:, :H])
        f = jax.nn.sigmoid(gates[:, H:2 * H])
        g = jnp.tanh(gates[:, 2 * H:3 * H])
        o = jax.nn.sigmoid(gates[:, 3 * H:])
        c = f * c + i * g
        h = o * jnp.tanh(c)
        return (h, c), h

    init = (jnp.zeros((B, H), jnp.float32), jnp.zeros((B, H), jnp.float32))
    (h, c), outs = jax.lax.scan(step, init, jnp.transpose(emb, (1, 0, 2)))
    return jnp.transpose(outs, (1, 0, 2)), (h[None], c[None])


if __name__ == "__main__":
    INPUT_SIZE = 16   # vocab size
    HIDDEN = 32
    B, T = 2, 8

    key = jax.random.PRNGKey(0)
    k_params, k_tok = jax.random.split(key)
    params = init_encoder_params(k_params, INPUT_SIZE, HIDDEN)
    tokens = jax.random.randint(k_tok, (B, T), 0, INPUT_SIZE, dtype=jnp.int32)

    out_ref, (h_ref, c_ref) = encoder_forward_ref(tokens, params)
    forward = make_encoder_forward(HIDDEN)

    # Default optimized path: bf16 MXU operands, f32 accumulation / cell state.
    kp_bf16 = prepare_kernel_params(params, HIDDEN, compute_dtype=jnp.bfloat16)
    out_b, (h_b, c_b) = forward(tokens, kp_bf16)
    jax.block_until_ready((out_b, h_b, c_b))

    # f32-operand path for a tight numerical check against the reference.
    kp_f32 = prepare_kernel_params(params, HIDDEN, compute_dtype=jnp.float32)
    out_f, (h_f, c_f) = forward(tokens, kp_f32)
    jax.block_until_ready((out_f, h_f, c_f))

    assert out_f.shape == (B, T, HIDDEN)
    assert h_f.shape == (1, B, HIDDEN) and c_f.shape == (1, B, HIDDEN)
    assert jnp.allclose(out_f, out_ref, rtol=1e-4, atol=1e-4)
    assert jnp.allclose(h_f, h_ref, rtol=1e-4, atol=1e-4)
    assert jnp.allclose(c_f, c_ref, rtol=1e-4, atol=1e-4)
    # bf16 operand path: looser tolerance (f32 accumulation keeps drift small).
    assert jnp.allclose(out_b, out_ref, rtol=5e-2, atol=5e-2)
    assert jnp.allclose(h_b, h_ref, rtol=5e-2, atol=5e-2)
    assert jnp.allclose(c_b, c_ref, rtol=5e-2, atol=5e-2)

    print("KERNEL_OK")
</pallas_src>

<mosaic_0001>
module attributes {stable_mosaic.version = 11 : i64} {
  func.func @lstm_kernel(%arg0: i32, %arg1: memref<8x2x512xf32, #tpu.memory_space<vmem>>, %arg2: memref<128x512xbf16, #tpu.memory_space<vmem>>, %arg3: memref<8x2x128xf32, #tpu.memory_space<vmem>>, %arg4: memref<2x128xf32, #tpu.memory_space<vmem>>, %arg5: memref<2x128xf32, #tpu.memory_space<vmem>>) attributes {dimension_semantics = [#tpu.dimension_semantics<arbitrary>], iteration_bounds = array<i64: 1>, scalar_prefetch = 0 : i64, scratch_operands = 0 : i64, tpu.core_type = #tpu.core_type<tc>, window_params = [{pipeline_mode = #tpu.pipeline_mode<synchronous>, transform_indices = @transform_0, window_bounds = array<i64: 8, 2, 512>}, {pipeline_mode = #tpu.pipeline_mode<synchronous>, transform_indices = @transform_1, window_bounds = array<i64: 128, 512>}, {pipeline_mode = #tpu.pipeline_mode<synchronous>, transform_indices = @transform_2, window_bounds = array<i64: 8, 2, 128>}, {pipeline_mode = #tpu.pipeline_mode<synchronous>, transform_indices = @transform_3, window_bounds = array<i64: 2, 128>}, {pipeline_mode = #tpu.pipeline_mode<synchronous>, transform_indices = @transform_4, window_bounds = array<i64: 2, 128>}]} {
    %c0 = arith.constant 0 : index
    %c0_0 = arith.constant 0 : index
    %0 = vector.load %arg2[%c0, %c0_0] : memref<128x512xbf16, #tpu.memory_space<vmem>>, vector<128x512xbf16>
    %cst = arith.constant 0.000000e+00 : f32
    %1 = vector.broadcast %cst : f32 to vector<2x128xf32>
    %cst_1 = arith.constant 0.000000e+00 : f32
    %2 = vector.broadcast %cst_1 : f32 to vector<2x128xf32>
    %c0_i32 = arith.constant 0 : i32
    %3 = arith.index_cast %c0_i32 : i32 to index
    %c0_2 = arith.constant 0 : index
    %c0_3 = arith.constant 0 : index
    %4 = vector.load %arg1[%3, %c0_2, %c0_3] : memref<8x2x512xf32, #tpu.memory_space<vmem>>, vector<1x2x512xf32>
    %5 = vector.shape_cast %4 : vector<1x2x512xf32> to vector<2x512xf32>
    %6 = arith.truncf %1 : vector<2x128xf32> to vector<2x128xbf16>
    %cst_4 = arith.constant dense<0.000000e+00> : vector<2x512xf32>
    %7 = tpu.matmul %6, %0, %cst_4 {dimension_numbers = #tpu.dot_dimension_numbers<[1], [0], [0], [1], [0, 0, 1, 1], [], []>} : vector<2x128xbf16>, vector<128x512xbf16>, vector<2x512xf32> -> vector<2x512xf32>
    %8 = arith.addf %5, %7 : vector<2x512xf32>
    %9 = vector.extract_strided_slice %8 {offsets = [0, 0], sizes = [2, 128], strides = [1, 1]} : vector<2x512xf32> to vector<2x128xf32>
    %cst_5 = arith.constant 5.000000e-01 : f32
    %10 = vector.broadcast %cst_5 : f32 to vector<2x128xf32>
    %11 = arith.mulf %10, %9 : vector<2x128xf32>
    %12 = math.tanh %11 : vector<2x128xf32>
    %cst_6 = arith.constant 1.000000e+00 : f32
    %13 = vector.broadcast %cst_6 : f32 to vector<2x128xf32>
    %14 = arith.addf %12, %13 : vector<2x128xf32>
    %cst_7 = arith.constant 5.000000e-01 : f32
    %15 = vector.broadcast %cst_7 : f32 to vector<2x128xf32>
    %16 = arith.mulf %15, %14 : vector<2x128xf32>
    %17 = vector.extract_strided_slice %8 {offsets = [0, 128], sizes = [2, 128], strides = [1, 1]} : vector<2x512xf32> to vector<2x128xf32>
    %cst_8 = arith.constant 5.000000e-01 : f32
    %18 = vector.broadcast %cst_8 : f32 to vector<2x128xf32>
    %19 = arith.mulf %18, %17 : vector<2x128xf32>
    %20 = math.tanh %19 : vector<2x128xf32>
    %cst_9 = arith.constant 1.000000e+00 : f32
    %21 = vector.broadcast %cst_9 : f32 to vector<2x128xf32>
    %22 = arith.addf %20, %21 : vector<2x128xf32>
    %cst_10 = arith.constant 5.000000e-01 : f32
    %23 = vector.broadcast %cst_10 : f32 to vector<2x128xf32>
    %24 = arith.mulf %23, %22 : vector<2x128xf32>
    %25 = vector.extract_strided_slice %8 {offsets = [0, 256], sizes = [2, 128], strides = [1, 1]} : vector<2x512xf32> to vector<2x128xf32>
    %26 = math.tanh %25 : vector<2x128xf32>
    %27 = vector.extract_strided_slice %8 {offsets = [0, 384], sizes = [2, 128], strides = [1, 1]} : vector<2x512xf32> to vector<2x128xf32>
    %cst_11 = arith.constant 5.000000e-01 : f32
    %28 = vector.broadcast %cst_11 : f32 to vector<2x128xf32>
    %29 = arith.mulf %28, %27 : vector<2x128xf32>
    %30 = math.tanh %29 : vector<2x128xf32>
    %cst_12 = arith.constant 1.000000e+00 : f32
    %31 = vector.broadcast %cst_12 : f32 to vector<2x128xf32>
    %32 = arith.addf %30, %31 : vector<2x128xf32>
    %cst_13 = arith.constant 5.000000e-01 : f32
    %33 = vector.broadcast %cst_13 : f32 to vector<2x128xf32>
    %34 = arith.mulf %33, %32 : vector<2x128xf32>
    %35 = arith.mulf %24, %2 : vector<2x128xf32>
    %36 = arith.mulf %16, %26 : vector<2x128xf32>
    %37 = arith.addf %35, %36 : vector<2x128xf32>
    %38 = math.tanh %37 : vector<2x128xf32>
    %39 = arith.mulf %34, %38 : vector<2x128xf32>
    %40 = arith.index_cast %c0_i32 : i32 to index
    %c0_14 = arith.constant 0 : index
    %c0_15 = arith.constant 0 : index
    %41 = vector.load %arg3[%40, %c0_14, %c0_15] : memref<8x2x128xf32, #tpu.memory_space<vmem>>, vector<1x2x128xf32>
    %42 = vector.shape_cast %41 : vector<1x2x128xf32> to vector<2x128xf32>
    %43 = vector.shape_cast %39 : vector<2x128xf32> to vector<1x2x128xf32>
    tpu.vector_store %arg3[%40, %c0_14, %c0_15], %43 {strides = array<i32>} : memref<8x2x128xf32, #tpu.memory_space<vmem>>, vector<1x2x128xf32>,
    %c1_i32 = arith.constant 1 : i32
    %44 = arith.index_cast %c1_i32 : i32 to index
    %c0_16 = arith.constant 0 : index
    %c0_17 = arith.constant 0 : index
    %45 = vector.load %arg1[%44, %c0_16, %c0_17] : memref<8x2x512xf32, #tpu.memory_space<vmem>>, vector<1x2x512xf32>
    %46 = vector.shape_cast %45 : vector<1x2x512xf32> to vector<2x512xf32>
    %47 = arith.truncf %39 : vector<2x128xf32> to vector<2x128xbf16>
    %cst_18 = arith.constant dense<0.000000e+00> : vector<2x512xf32>
    %48 = tpu.matmul %47, %0, %cst_18 {dimension_numbers = #tpu.dot_dimension_numbers<[1], [0], [0], [1], [0, 0, 1, 1], [], []>} : vector<2x128xbf16>, vector<128x512xbf16>, vector<2x512xf32> -> vector<2x512xf32>
    %49 = arith.addf %46, %48 : vector<2x512xf32>
    %50 = vector.extract_strided_slice %49 {offsets = [0, 0], sizes = [2, 128], strides = [1, 1]} : vector<2x512xf32> to vector<2x128xf32>
    %cst_19 = arith.constant 5.000000e-01 : f32
    %51 = vector.broadcast %cst_19 : f32 to vector<2x128xf32>
    %52 = arith.mulf %51, %50 : vector<2x128xf32>
    %53 = math.tanh %52 : vector<2x128xf32>
    %cst_20 = arith.constant 1.000000e+00 : f32
    %54 = vector.broadcast %cst_20 : f32 to vector<2x128xf32>
    %55 = arith.addf %53, %54 : vector<2x128xf32>
    %cst_21 = arith.constant 5.000000e-01 : f32
    %56 = vector.broadcast %cst_21 : f32 to vector<2x128xf32>
    %57 = arith.mulf %56, %55 : vector<2x128xf32>
    %58 = vector.extract_strided_slice %49 {offsets = [0, 128], sizes = [2, 128], strides = [1, 1]} : vector<2x512xf32> to vector<2x128xf32>
    %cst_22 = arith.constant 5.000000e-01 : f32
    %59 = vector.broadcast %cst_22 : f32 to vector<2x128xf32>
    %60 = arith.mulf %59, %58 : vector<2x128xf32>
    %61 = math.tanh %60 : vector<2x128xf32>
    %cst_23 = arith.constant 1.000000e+00 : f32
    %62 = vector.broadcast %cst_23 : f32 to vector<2x128xf32>
    %63 = arith.addf %61, %62 : vector<2x128xf32>
    %cst_24 = arith.constant 5.000000e-01 : f32
    %64 = vector.broadcast %cst_24 : f32 to vector<2x128xf32>
    %65 = arith.mulf %64, %63 : vector<2x128xf32>
    %66 = vector.extract_strided_slice %49 {offsets = [0, 256], sizes = [2, 128], strides = [1, 1]} : vector<2x512xf32> to vector<2x128xf32>
    %67 = math.tanh %66 : vector<2x128xf32>
    %68 = vector.extract_strided_slice %49 {offsets = [0, 384], sizes = [2, 128], strides = [1, 1]} : vector<2x512xf32> to vector<2x128xf32>
    %cst_25 = arith.constant 5.000000e-01 : f32
    %69 = vector.broadcast %cst_25 : f32 to vector<2x128xf32>
    %70 = arith.mulf %69, %68 : vector<2x128xf32>
    %71 = math.tanh %70 : vector<2x128xf32>
    %cst_26 = arith.constant 1.000000e+00 : f32
    %72 = vector.broadcast %cst_26 : f32 to vector<2x128xf32>
    %73 = arith.addf %71, %72 : vector<2x128xf32>
    %cst_27 = arith.constant 5.000000e-01 : f32
    %74 = vector.broadcast %cst_27 : f32 to vector<2x128xf32>
    %75 = arith.mulf %74, %73 : vector<2x128xf32>
    %76 = arith.mulf %65, %37 : vector<2x128xf32>
    %77 = arith.mulf %57, %67 : vector<2x128xf32>
    %78 = arith.addf %76, %77 : vector<2x128xf32>
    %79 = math.tanh %78 : vector<2x128xf32>
    %80 = arith.mulf %75, %79 : vector<2x128xf32>
    %81 = arith.index_cast %c1_i32 : i32 to index
    %c0_28 = arith.constant 0 : index
    %c0_29 = arith.constant 0 : index
    %82 = vector.load %arg3[%81, %c0_28, %c0_29] : memref<8x2x128xf32, #tpu.memory_space<vmem>>, vector<1x2x128xf32>
    %83 = vector.shape_cast %82 : vector<1x2x128xf32> to vector<2x128xf32>
    %84 = vector.shape_cast %80 : vector<2x128xf32> to vector<1x2x128xf32>
    tpu.vector_store %arg3[%81, %c0_28, %c0_29], %84 {strides = array<i32>} : memref<8x2x128xf32, #tpu.memory_space<vmem>>, vector<1x2x128xf32>,
    %c2_i32 = arith.constant 2 : i32
    %85 = arith.index_cast %c2_i32 : i32 to index
    %c0_30 = arith.constant 0 : index
    %c0_31 = arith.constant 0 : index
    %86 = vector.load %arg1[%85, %c0_30, %c0_31] : memref<8x2x512xf32, #tpu.memory_space<vmem>>, vector<1x2x512xf32>
    %87 = vector.shape_cast %86 : vector<1x2x512xf32> to vector<2x512xf32>
    %88 = arith.truncf %80 : vector<2x128xf32> to vector<2x128xbf16>
    %cst_32 = arith.constant dense<0.000000e+00> : vector<2x512xf32>
    %89 = tpu.matmul %88, %0, %cst_32 {dimension_numbers = #tpu.dot_dimension_numbers<[1], [0], [0], [1], [0, 0, 1, 1], [], []>} : vector<2x128xbf16>, vector<128x512xbf16>, vector<2x512xf32> -> vector<2x512xf32>
    %90 = arith.addf %87, %89 : vector<2x512xf32>
    %91 = vector.extract_strided_slice %90 {offsets = [0, 0], sizes = [2, 128], strides = [1, 1]} : vector<2x512xf32> to vector<2x128xf32>
    %cst_33 = arith.constant 5.000000e-01 : f32
    %92 = vector.broadcast %cst_33 : f32 to vector<2x128xf32>
    %93 = arith.mulf %92, %91 : vector<2x128xf32>
    %94 = math.tanh %93 : vector<2x128xf32>
    %cst_34 = arith.constant 1.000000e+00 : f32
    %95 = vector.broadcast %cst_34 : f32 to vector<2x128xf32>
    %96 = arith.addf %94, %95 : vector<2x128xf32>
    %cst_35 = arith.constant 5.000000e-01 : f32
    %97 = vector.broadcast %cst_35 : f32 to vector<2x128xf32>
    %98 = arith.mulf %97, %96 : vector<2x128xf32>
    %99 = vector.extract_strided_slice %90 {offsets = [0, 128], sizes = [2, 128], strides = [1, 1]} : vector<2x512xf32> to vector<2x128xf32>
    %cst_36 = arith.constant 5.000000e-01 : f32
    %100 = vector.broadcast %cst_36 : f32 to vector<2x128xf32>
    %101 = arith.mulf %100, %99 : vector<2x128xf32>
    %102 = math.tanh %101 : vector<2x128xf32>
    %cst_37 = arith.constant 1.000000e+00 : f32
    %103 = vector.broadcast %cst_37 : f32 to vector<2x128xf32>
    %104 = arith.addf %102, %103 : vector<2x128xf32>
    %cst_38 = arith.constant 5.000000e-01 : f32
    %105 = vector.broadcast %cst_38 : f32 to vector<2x128xf32>
    %106 = arith.mulf %105, %104 : vector<2x128xf32>
    %107 = vector.extract_strided_slice %90 {offsets = [0, 256], sizes = [2, 128], strides = [1, 1]} : vector<2x512xf32> to vector<2x128xf32>
    %108 = math.tanh %107 : vector<2x128xf32>
    %109 = vector.extract_strided_slice %90 {offsets = [0, 384], sizes = [2, 128], strides = [1, 1]} : vector<2x512xf32> to vector<2x128xf32>
    %cst_39 = arith.constant 5.000000e-01 : f32
    %110 = vector.broadcast %cst_39 : f32 to vector<2x128xf32>
    %111 = arith.mulf %110, %109 : vector<2x128xf32>
    %112 = math.tanh %111 : vector<2x128xf32>
    %cst_40 = arith.constant 1.000000e+00 : f32
    %113 = vector.broadcast %cst_40 : f32 to vector<2x128xf32>
    %114 = arith.addf %112, %113 : vector<2x128xf32>
    %cst_41 = arith.constant 5.000000e-01 : f32
    %115 = vector.broadcast %cst_41 : f32 to vector<2x128xf32>
    %116 = arith.mulf %115, %114 : vector<2x128xf32>
    %117 = arith.mulf %106, %78 : vector<2x128xf32>
    %118 = arith.mulf %98, %108 : vector<2x128xf32>
    %119 = arith.addf %117, %118 : vector<2x128xf32>
    %120 = math.tanh %119 : vector<2x128xf32>
    %121 = arith.mulf %116, %120 : vector<2x128xf32>
    %122 = arith.index_cast %c2_i32 : i32 to index
    %c0_42 = arith.constant 0 : index
    %c0_43 = arith.constant 0 : index
    %123 = vector.load %arg3[%122, %c0_42, %c0_43] : memref<8x2x128xf32, #tpu.memory_space<vmem>>, vector<1x2x128xf32>
    %124 = vector.shape_cast %123 : vector<1x2x128xf32> to vector<2x128xf32>
    %125 = vector.shape_cast %121 : vector<2x128xf32> to vector<1x2x128xf32>
    tpu.vector_store %arg3[%122, %c0_42, %c0_43], %125 {strides = array<i32>} : memref<8x2x128xf32, #tpu.memory_space<vmem>>, vector<1x2x128xf32>,
    %c3_i32 = arith.constant 3 : i32
    %126 = arith.index_cast %c3_i32 : i32 to index
    %c0_44 = arith.constant 0 : index
    %c0_45 = arith.constant 0 : index
    %127 = vector.load %arg1[%126, %c0_44, %c0_45] : memref<8x2x512xf32, #tpu.memory_space<vmem>>, vector<1x2x512xf32>
    %128 = vector.shape_cast %127 : vector<1x2x512xf32> to vector<2x512xf32>
    %129 = arith.truncf %121 : vector<2x128xf32> to vector<2x128xbf16>
    %cst_46 = arith.constant dense<0.000000e+00> : vector<2x512xf32>
    %130 = tpu.matmul %129, %0, %cst_46 {dimension_numbers = #tpu.dot_dimension_numbers<[1], [0], [0], [1], [0, 0, 1, 1], [], []>} : vector<2x128xbf16>, vector<128x512xbf16>, vector<2x512xf32> -> vector<2x512xf32>
    %131 = arith.addf %128, %130 : vector<2x512xf32>
    %132 = vector.extract_strided_slice %131 {offsets = [0, 0], sizes = [2, 128], strides = [1, 1]} : vector<2x512xf32> to vector<2x128xf32>
    %cst_47 = arith.constant 5.000000e-01 : f32
    %133 = vector.broadcast %cst_47 : f32 to vector<2x128xf32>
    %134 = arith.mulf %133, %132 : vector<2x128xf32>
    %135 = math.tanh %134 : vector<2x128xf32>
    %cst_48 = arith.constant 1.000000e+00 : f32
    %136 = vector.broadcast %cst_48 : f32 to vector<2x128xf32>
    %137 = arith.addf %135, %136 : vector<2x128xf32>
    %cst_49 = arith.constant 5.000000e-01 : f32
    %138 = vector.broadcast %cst_49 : f32 to vector<2x128xf32>
    %139 = arith.mulf %138, %137 : vector<2x128xf32>
    %140 = vector.extract_strided_slice %131 {offsets = [0, 128], sizes = [2, 128], strides = [1, 1]} : vector<2x512xf32> to vector<2x128xf32>
    %cst_50 = arith.constant 5.000000e-01 : f32
    %141 = vector.broadcast %cst_50 : f32 to vector<2x128xf32>
    %142 = arith.mulf %141, %140 : vector<2x128xf32>
    %143 = math.tanh %142 : vector<2x128xf32>
    %cst_51 = arith.constant 1.000000e+00 : f32
    %144 = vector.broadcast %cst_51 : f32 to vector<2x128xf32>
    %145 = arith.addf %143, %144 : vector<2x128xf32>
    %cst_52 = arith.constant 5.000000e-01 : f32
    %146 = vector.broadcast %cst_52 : f32 to vector<2x128xf32>
    %147 = arith.mulf %146, %145 : vector<2x128xf32>
    %148 = vector.extract_strided_slice %131 {offsets = [0, 256], sizes = [2, 128], strides = [1, 1]} : vector<2x512xf32> to vector<2x128xf32>
    %149 = math.tanh %148 : vector<2x128xf32>
    %150 = vector.extract_strided_slice %131 {offsets = [0, 384], sizes = [2, 128], strides = [1, 1]} : vector<2x512xf32> to vector<2x128xf32>
    %cst_53 = arith.constant 5.000000e-01 : f32
    %151 = vector.broadcast %cst_53 : f32 to vector<2x128xf32>
    %152 = arith.mulf %151, %150 : vector<2x128xf32>
    %153 = math.tanh %152 : vector<2x128xf32>
    %cst_54 = arith.constant 1.000000e+00 : f32
    %154 = vector.broadcast %cst_54 : f32 to vector<2x128xf32>
    %155 = arith.addf %153, %154 : vector<2x128xf32>
    %cst_55 = arith.constant 5.000000e-01 : f32
    %156 = vector.broadcast %cst_55 : f32 to vector<2x128xf32>
    %157 = arith.mulf %156, %155 : vector<2x128xf32>
    %158 = arith.mulf %147, %119 : vector<2x128xf32>
    %159 = arith.mulf %139, %149 : vector<2x128xf32>
    %160 = arith.addf %158, %159 : vector<2x128xf32>
    %161 = math.tanh %160 : vector<2x128xf32>
    %162 = arith.mulf %157, %161 : vector<2x128xf32>
    %163 = arith.index_cast %c3_i32 : i32 to index
    %c0_56 = arith.constant 0 : index
    %c0_57 = arith.constant 0 : index
    %164 = vector.load %arg3[%163, %c0_56, %c0_57] : memref<8x2x128xf32, #tpu.memory_space<vmem>>, vector<1x2x128xf32>
    %165 = vector.shape_cast %164 : vector<1x2x128xf32> to vector<2x128xf32>
    %166 = vector.shape_cast %162 : vector<2x128xf32> to vector<1x2x128xf32>
    tpu.vector_store %arg3[%163, %c0_56, %c0_57], %166 {strides = array<i32>} : memref<8x2x128xf32, #tpu.memory_space<vmem>>, vector<1x2x128xf32>,
    %c4_i32 = arith.constant 4 : i32
    %167 = arith.index_cast %c4_i32 : i32 to index
    %c0_58 = arith.constant 0 : index
    %c0_59 = arith.constant 0 : index
    %168 = vector.load %arg1[%167, %c0_58, %c0_59] : memref<8x2x512xf32, #tpu.memory_space<vmem>>, vector<1x2x512xf32>
    %169 = vector.shape_cast %168 : vector<1x2x512xf32> to vector<2x512xf32>
    %170 = arith.truncf %162 : vector<2x128xf32> to vector<2x128xbf16>
    %cst_60 = arith.constant dense<0.000000e+00> : vector<2x512xf32>
    %171 = tpu.matmul %170, %0, %cst_60 {dimension_numbers = #tpu.dot_dimension_numbers<[1], [0], [0], [1], [0, 0, 1, 1], [], []>} : vector<2x128xbf16>, vector<128x512xbf16>, vector<2x512xf32> -> vector<2x512xf32>
    %172 = arith.addf %169, %171 : vector<2x512xf32>
    %173 = vector.extract_strided_slice %172 {offsets = [0, 0], sizes = [2, 128], strides = [1, 1]} : vector<2x512xf32> to vector<2x128xf32>
    %cst_61 = arith.constant 5.000000e-01 : f32
    %174 = vector.broadcast %cst_61 : f32 to vector<2x128xf32>
    %175 = arith.mulf %174, %173 : vector<2x128xf32>
    %176 = math.tanh %175 : vector<2x128xf32>
    %cst_62 = arith.constant 1.000000e+00 : f32
    %177 = vector.broadcast %cst_62 : f32 to vector<2x128xf32>
    %178 = arith.addf %176, %177 : vector<2x128xf32>
    %cst_63 = arith.constant 5.000000e-01 : f32
    %179 = vector.broadcast %cst_63 : f32 to vector<2x128xf32>
    %180 = arith.mulf %179, %178 : vector<2x128xf32>
    %181 = vector.extract_strided_slice %172 {offsets = [0, 128], sizes = [2, 128], strides = [1, 1]} : vector<2x512xf32> to vector<2x128xf32>
    %cst_64 = arith.constant 5.000000e-01 : f32
    %182 = vector.broadcast %cst_64 : f32 to vector<2x128xf32>
    %183 = arith.mulf %182, %181 : vector<2x128xf32>
    %184 = math.tanh %183 : vector<2x128xf32>
    %cst_65 = arith.constant 1.000000e+00 : f32
    %185 = vector.broadcast %cst_65 : f32 to vector<2x128xf32>
    %186 = arith.addf %184, %185 : vector<2x128xf32>
    %cst_66 = arith.constant 5.000000e-01 : f32
    %187 = vector.broadcast %cst_66 : f32 to vector<2x128xf32>
    %188 = arith.mulf %187, %186 : vector<2x128xf32>
    %189 = vector.extract_strided_slice %172 {offsets = [0, 256], sizes = [2, 128], strides = [1, 1]} : vector<2x512xf32> to vector<2x128xf32>
    %190 = math.tanh %189 : vector<2x128xf32>
    %191 = vector.extract_strided_slice %172 {offsets = [0, 384], sizes = [2, 128], strides = [1, 1]} : vector<2x512xf32> to vector<2x128xf32>
    %cst_67 = arith.constant 5.000000e-01 : f32
    %192 = vector.broadcast %cst_67 : f32 to vector<2x128xf32>
    %193 = arith.mulf %192, %191 : vector<2x128xf32>
    %194 = math.tanh %193 : vector<2x128xf32>
    %cst_68 = arith.constant 1.000000e+00 : f32
    %195 = vector.broadcast %cst_68 : f32 to vector<2x128xf32>
    %196 = arith.addf %194, %195 : vector<2x128xf32>
    %cst_69 = arith.constant 5.000000e-01 : f32
    %197 = vector.broadcast %cst_69 : f32 to vector<2x128xf32>
    %198 = arith.mulf %197, %196 : vector<2x128xf32>
    %199 = arith.mulf %188, %160 : vector<2x128xf32>
    %200 = arith.mulf %180, %190 : vector<2x128xf32>
    %201 = arith.addf %199, %200 : vector<2x128xf32>
    %202 = math.tanh %201 : vector<2x128xf32>
    %203 = arith.mulf %198, %202 : vector<2x128xf32>
    %204 = arith.index_cast %c4_i32 : i32 to index
    %c0_70 = arith.constant 0 : index
    %c0_71 = arith.constant 0 : index
    %205 = vector.load %arg3[%204, %c0_70, %c0_71] : memref<8x2x128xf32, #tpu.memory_space<vmem>>, vector<1x2x128xf32>
    %206 = vector.shape_cast %205 : vector<1x2x128xf32> to vector<2x128xf32>
    %207 = vector.shape_cast %203 : vector<2x128xf32> to vector<1x2x128xf32>
    tpu.vector_store %arg3[%204, %c0_70, %c0_71], %207 {strides = array<i32>} : memref<8x2x128xf32, #tpu.memory_space<vmem>>, vector<1x2x128xf32>,
    %c5_i32 = arith.constant 5 : i32
    %208 = arith.index_cast %c5_i32 : i32 to index
    %c0_72 = arith.constant 0 : index
    %c0_73 = arith.constant 0 : index
    %209 = vector.load %arg1[%208, %c0_72, %c0_73] : memref<8x2x512xf32, #tpu.memory_space<vmem>>, vector<1x2x512xf32>
    %210 = vector.shape_cast %209 : vector<1x2x512xf32> to vector<2x512xf32>
    %211 = arith.truncf %203 : vector<2x128xf32> to vector<2x128xbf16>
    %cst_74 = arith.constant dense<0.000000e+00> : vector<2x512xf32>
    %212 = tpu.matmul %211, %0, %cst_74 {dimension_numbers = #tpu.dot_dimension_numbers<[1], [0], [0], [1], [0, 0, 1, 1], [], []>} : vector<2x128xbf16>, vector<128x512xbf16>, vector<2x512xf32> -> vector<2x512xf32>
    %213 = arith.addf %210, %212 : vector<2x512xf32>
    %214 = vector.extract_strided_slice %213 {offsets = [0, 0], sizes = [2, 128], strides = [1, 1]} : vector<2x512xf32> to vector<2x128xf32>
    %cst_75 = arith.constant 5.000000e-01 : f32
    %215 = vector.broadcast %cst_75 : f32 to vector<2x128xf32>
    %216 = arith.mulf %215, %214 : vector<2x128xf32>
    %217 = math.tanh %216 : vector<2x128xf32>
    %cst_76 = arith.constant 1.000000e+00 : f32
    %218 = vector.broadcast %cst_76 : f32 to vector<2x128xf32>
    %219 = arith.addf %217, %218 : vector<2x128xf32>
    %cst_77 = arith.constant 5.000000e-01 : f32
    %220 = vector.broadcast %cst_77 : f32 to vector<2x128xf32>
    %221 = arith.mulf %220, %219 : vector<2x128xf32>
    %222 = vector.extract_strided_slice %213 {offsets = [0, 128], sizes = [2, 128], strides = [1, 1]} : vector<2x512xf32> to vector<2x128xf32>
    %cst_78 = arith.constant 5.000000e-01 : f32
    %223 = vector.broadcast %cst_78 : f32 to vector<2x128xf32>
    %224 = arith.mulf %223, %222 : vector<2x128xf32>
    %225 = math.tanh %224 : vector<2x128xf32>
    %cst_79 = arith.constant 1.000000e+00 : f32
    %226 = vector.broadcast %cst_79 : f32 to vector<2x128xf32>
    %227 = arith.addf %225, %226 : vector<2x128xf32>
    %cst_80 = arith.constant 5.000000e-01 : f32
    %228 = vector.broadcast %cst_80 : f32 to vector<2x128xf32>
    %229 = arith.mulf %228, %227 : vector<2x128xf32>
    %230 = vector.extract_strided_slice %213 {offsets = [0, 256], sizes = [2, 128], strides = [1, 1]} : vector<2x512xf32> to vector<2x128xf32>
    %231 = math.tanh %230 : vector<2x128xf32>
    %232 = vector.extract_strided_slice %213 {offsets = [0, 384], sizes = [2, 128], strides = [1, 1]} : vector<2x512xf32> to vector<2x128xf32>
    %cst_81 = arith.constant 5.000000e-01 : f32
    %233 = vector.broadcast %cst_81 : f32 to vector<2x128xf32>
    %234 = arith.mulf %233, %232 : vector<2x128xf32>
    %235 = math.tanh %234 : vector<2x128xf32>
    %cst_82 = arith.constant 1.000000e+00 : f32
    %236 = vector.broadcast %cst_82 : f32 to vector<2x128xf32>
    %237 = arith.addf %235, %236 : vector<2x128xf32>
    %cst_83 = arith.constant 5.000000e-01 : f32
    %238 = vector.broadcast %cst_83 : f32 to vector<2x128xf32>
    %239 = arith.mulf %238, %237 : vector<2x128xf32>
    %240 = arith.mulf %229, %201 : vector<2x128xf32>
    %241 = arith.mulf %221, %231 : vector<2x128xf32>
    %242 = arith.addf %240, %241 : vector<2x128xf32>
    %243 = math.tanh %242 : vector<2x128xf32>
    %244 = arith.mulf %239, %243 : vector<2x128xf32>
    %245 = arith.index_cast %c5_i32 : i32 to index
    %c0_84 = arith.constant 0 : index
    %c0_85 = arith.constant 0 : index
    %246 = vector.load %arg3[%245, %c0_84, %c0_85] : memref<8x2x128xf32, #tpu.memory_space<vmem>>, vector<1x2x128xf32>
    %247 = vector.shape_cast %246 : vector<1x2x128xf32> to vector<2x128xf32>
    %248 = vector.shape_cast %244 : vector<2x128xf32> to vector<1x2x128xf32>
    tpu.vector_store %arg3[%245, %c0_84, %c0_85], %248 {strides = array<i32>} : memref<8x2x128xf32, #tpu.memory_space<vmem>>, vector<1x2x128xf32>,
    %c6_i32 = arith.constant 6 : i32
    %249 = arith.index_cast %c6_i32 : i32 to index
    %c0_86 = arith.constant 0 : index
    %c0_87 = arith.constant 0 : index
    %250 = vector.load %arg1[%249, %c0_86, %c0_87] : memref<8x2x512xf32, #tpu.memory_space<vmem>>, vector<1x2x512xf32>
    %251 = vector.shape_cast %250 : vector<1x2x512xf32> to vector<2x512xf32>
    %252 = arith.truncf %244 : vector<2x128xf32> to vector<2x128xbf16>
    %cst_88 = arith.constant dense<0.000000e+00> : vector<2x512xf32>
    %253 = tpu.matmul %252, %0, %cst_88 {dimension_numbers = #tpu.dot_dimension_numbers<[1], [0], [0], [1], [0, 0, 1, 1], [], []>} : vector<2x128xbf16>, vector<128x512xbf16>, vector<2x512xf32> -> vector<2x512xf32>
    %254 = arith.addf %251, %253 : vector<2x512xf32>
    %255 = vector.extract_strided_slice %254 {offsets = [0, 0], sizes = [2, 128], strides = [1, 1]} : vector<2x512xf32> to vector<2x128xf32>
    %cst_89 = arith.constant 5.000000e-01 : f32
    %256 = vector.broadcast %cst_89 : f32 to vector<2x128xf32>
    %257 = arith.mulf %256, %255 : vector<2x128xf32>
    %258 = math.tanh %257 : vector<2x128xf32>
    %cst_90 = arith.constant 1.000000e+00 : f32
    %259 = vector.broadcast %cst_90 : f32 to vector<2x128xf32>
    %260 = arith.addf %258, %259 : vector<2x128xf32>
    %cst_91 = arith.constant 5.000000e-01 : f32
    %261 = vector.broadcast %cst_91 : f32 to vector<2x128xf32>
    %262 = arith.mulf %261, %260 : vector<2x128xf32>
    %263 = vector.extract_strided_slice %254 {offsets = [0, 128], sizes = [2, 128], strides = [1, 1]} : vector<2x512xf32> to vector<2x128xf32>
    %cst_92 = arith.constant 5.000000e-01 : f32
    %264 = vector.broadcast %cst_92 : f32 to vector<2x128xf32>
    %265 = arith.mulf %264, %263 : vector<2x128xf32>
    %266 = math.tanh %265 : vector<2x128xf32>
    %cst_93 = arith.constant 1.000000e+00 : f32
    %267 = vector.broadcast %cst_93 : f32 to vector<2x128xf32>
    %268 = arith.addf %266, %267 : vector<2x128xf32>
    %cst_94 = arith.constant 5.000000e-01 : f32
    %269 = vector.broadcast %cst_94 : f32 to vector<2x128xf32>
    %270 = arith.mulf %269, %268 : vector<2x128xf32>
    %271 = vector.extract_strided_slice %254 {offsets = [0, 256], sizes = [2, 128], strides = [1, 1]} : vector<2x512xf32> to vector<2x128xf32>
    %272 = math.tanh %271 : vector<2x128xf32>
    %273 = vector.extract_strided_slice %254 {offsets = [0, 384], sizes = [2, 128], strides = [1, 1]} : vector<2x512xf32> to vector<2x128xf32>
    %cst_95 = arith.constant 5.000000e-01 : f32
    %274 = vector.broadcast %cst_95 : f32 to vector<2x128xf32>
    %275 = arith.mulf %274, %273 : vector<2x128xf32>
    %276 = math.tanh %275 : vector<2x128xf32>
    %cst_96 = arith.constant 1.000000e+00 : f32
    %277 = vector.broadcast %cst_96 : f32 to vector<2x128xf32>
    %278 = arith.addf %276, %277 : vector<2x128xf32>
    %cst_97 = arith.constant 5.000000e-01 : f32
    %279 = vector.broadcast %cst_97 : f32 to vector<2x128xf32>
    %280 = arith.mulf %279, %278 : vector<2x128xf32>
    %281 = arith.mulf %270, %242 : vector<2x128xf32>
    %282 = arith.mulf %262, %272 : vector<2x128xf32>
    %283 = arith.addf %281, %282 : vector<2x128xf32>
    %284 = math.tanh %283 : vector<2x128xf32>
    %285 = arith.mulf %280, %284 : vector<2x128xf32>
    %286 = arith.index_cast %c6_i32 : i32 to index
    %c0_98 = arith.constant 0 : index
    %c0_99 = arith.constant 0 : index
    %287 = vector.load %arg3[%286, %c0_98, %c0_99] : memref<8x2x128xf32, #tpu.memory_space<vmem>>, vector<1x2x128xf32>
    %288 = vector.shape_cast %287 : vector<1x2x128xf32> to vector<2x128xf32>
    %289 = vector.shape_cast %285 : vector<2x128xf32> to vector<1x2x128xf32>
    tpu.vector_store %arg3[%286, %c0_98, %c0_99], %289 {strides = array<i32>} : memref<8x2x128xf32, #tpu.memory_space<vmem>>, vector<1x2x128xf32>,
    %c7_i32 = arith.constant 7 : i32
    %290 = arith.index_cast %c7_i32 : i32 to index
    %c0_100 = arith.constant 0 : index
    %c0_101 = arith.constant 0 : index
    %291 = vector.load %arg1[%290, %c0_100, %c0_101] : memref<8x2x512xf32, #tpu.memory_space<vmem>>, vector<1x2x512xf32>
    %292 = vector.shape_cast %291 : vector<1x2x512xf32> to vector<2x512xf32>
    %293 = arith.truncf %285 : vector<2x128xf32> to vector<2x128xbf16>
    %cst_102 = arith.constant dense<0.000000e+00> : vector<2x512xf32>
    %294 = tpu.matmul %293, %0, %cst_102 {dimension_numbers = #tpu.dot_dimension_numbers<[1], [0], [0], [1], [0, 0, 1, 1], [], []>} : vector<2x128xbf16>, vector<128x512xbf16>, vector<2x512xf32> -> vector<2x512xf32>
    %295 = arith.addf %292, %294 : vector<2x512xf32>
    %296 = vector.extract_strided_slice %295 {offsets = [0, 0], sizes = [2, 128], strides = [1, 1]} : vector<2x512xf32> to vector<2x128xf32>
    %cst_103 = arith.constant 5.000000e-01 : f32
    %297 = vector.broadcast %cst_103 : f32 to vector<2x128xf32>
    %298 = arith.mulf %297, %296 : vector<2x128xf32>
    %299 = math.tanh %298 : vector<2x128xf32>
    %cst_104 = arith.constant 1.000000e+00 : f32
    %300 = vector.broadcast %cst_104 : f32 to vector<2x128xf32>
    %301 = arith.addf %299, %300 : vector<2x128xf32>
    %cst_105 = arith.constant 5.000000e-01 : f32
    %302 = vector.broadcast %cst_105 : f32 to vector<2x128xf32>
    %303 = arith.mulf %302, %301 : vector<2x128xf32>
    %304 = vector.extract_strided_slice %295 {offsets = [0, 128], sizes = [2, 128], strides = [1, 1]} : vector<2x512xf32> to vector<2x128xf32>
    %cst_106 = arith.constant 5.000000e-01 : f32
    %305 = vector.broadcast %cst_106 : f32 to vector<2x128xf32>
    %306 = arith.mulf %305, %304 : vector<2x128xf32>
    %307 = math.tanh %306 : vector<2x128xf32>
    %cst_107 = arith.constant 1.000000e+00 : f32
    %308 = vector.broadcast %cst_107 : f32 to vector<2x128xf32>
    %309 = arith.addf %307, %308 : vector<2x128xf32>
    %cst_108 = arith.constant 5.000000e-01 : f32
    %310 = vector.broadcast %cst_108 : f32 to vector<2x128xf32>
    %311 = arith.mulf %310, %309 : vector<2x128xf32>
    %312 = vector.extract_strided_slice %295 {offsets = [0, 256], sizes = [2, 128], strides = [1, 1]} : vector<2x512xf32> to vector<2x128xf32>
    %313 = math.tanh %312 : vector<2x128xf32>
    %314 = vector.extract_strided_slice %295 {offsets = [0, 384], sizes = [2, 128], strides = [1, 1]} : vector<2x512xf32> to vector<2x128xf32>
    %cst_109 = arith.constant 5.000000e-01 : f32
    %315 = vector.broadcast %cst_109 : f32 to vector<2x128xf32>
    %316 = arith.mulf %315, %314 : vector<2x128xf32>
    %317 = math.tanh %316 : vector<2x128xf32>
    %cst_110 = arith.constant 1.000000e+00 : f32
    %318 = vector.broadcast %cst_110 : f32 to vector<2x128xf32>
    %319 = arith.addf %317, %318 : vector<2x128xf32>
    %cst_111 = arith.constant 5.000000e-01 : f32
    %320 = vector.broadcast %cst_111 : f32 to vector<2x128xf32>
    %321 = arith.mulf %320, %319 : vector<2x128xf32>
    %322 = arith.mulf %311, %283 : vector<2x128xf32>
    %323 = arith.mulf %303, %313 : vector<2x128xf32>
    %324 = arith.addf %322, %323 : vector<2x128xf32>
    %325 = math.tanh %324 : vector<2x128xf32>
    %326 = arith.mulf %321, %325 : vector<2x128xf32>
    %327 = arith.index_cast %c7_i32 : i32 to index
    %c0_112 = arith.constant 0 : index
    %c0_113 = arith.constant 0 : index
    %328 = vector.load %arg3[%327, %c0_112, %c0_113] : memref<8x2x128xf32, #tpu.memory_space<vmem>>, vector<1x2x128xf32>
    %329 = vector.shape_cast %328 : vector<1x2x128xf32> to vector<2x128xf32>
    %330 = vector.shape_cast %326 : vector<2x128xf32> to vector<1x2x128xf32>
    tpu.vector_store %arg3[%327, %c0_112, %c0_113], %330 {strides = array<i32>} : memref<8x2x128xf32, #tpu.memory_space<vmem>>, vector<1x2x128xf32>,
    %c8_i32 = arith.constant 8 : i32
    %c0_114 = arith.constant 0 : index
    %c0_115 = arith.constant 0 : index
    %331 = vector.load %arg4[%c0_114, %c0_115] : memref<2x128xf32, #tpu.memory_space<vmem>>, vector<2x128xf32>
    tpu.vector_store %arg4[%c0_114, %c0_115], %326 {strides = array<i32>} : memref<2x128xf32, #tpu.memory_space<vmem>>, vector<2x128xf32>,
    %c0_116 = arith.constant 0 : index
    %c0_117 = arith.constant 0 : index
    %332 = vector.load %arg5[%c0_116, %c0_117] : memref<2x128xf32, #tpu.memory_space<vmem>>, vector<2x128xf32>
    tpu.vector_store %arg5[%c0_116, %c0_117], %324 {strides = array<i32>} : memref<2x128xf32, #tpu.memory_space<vmem>>, vector<2x128xf32>,
    return
  }
  func.func @transform_0(%arg0: i32) -> (i32, i32, i32) {
    %c0_i32 = arith.constant 0 : i32
    %c0_i32_0 = arith.constant 0 : i32
    %c0_i32_1 = arith.constant 0 : i32
    %c0_i32_2 = arith.constant 0 : i32
    return %c0_i32, %c0_i32_0, %c0_i32_1 : i32, i32, i32
  }
  func.func @transform_1(%arg0: i32) -> (i32, i32) {
    %c0_i32 = arith.constant 0 : i32
    %c0_i32_0 = arith.constant 0 : i32
    %c0_i32_1 = arith.constant 0 : i32
    return %c0_i32, %c0_i32_0 : i32, i32
  }
  func.func @transform_2(%arg0: i32) -> (i32, i32, i32) {
    %c0_i32 = arith.constant 0 : i32
    %c0_i32_0 = arith.constant 0 : i32
    %c0_i32_1 = arith.constant 0 : i32
    %c0_i32_2 = arith.constant 0 : i32
    return %c0_i32, %c0_i32_0, %c0_i32_1 : i32, i32, i32
  }
  func.func @transform_3(%arg0: i32) -> (i32, i32) {
    %c0_i32 = arith.constant 0 : i32
    %c0_i32_0 = arith.constant 0 : i32
    %c0_i32_1 = arith.constant 0 : i32
    return %c0_i32, %c0_i32_0 : i32, i32
  }
  func.func @transform_4(%arg0: i32) -> (i32, i32) {
    %c0_i32 = arith.constant 0 : i32
    %c0_i32_0 = arith.constant 0 : i32
    %c0_i32_1 = arith.constant 0 : i32
    return %c0_i32, %c0_i32_0 : i32, i32
  }
}

</mosaic_0001>

<bundles_post_ra>
// kernel: forward.1
= control target key start
LH: loop header
LB: loop body
LE: loop exit
PB: predicated region body
PF: predicated region fallthrough
CT: control target
= control target key end

     0   :  { %v1506_v1 = vmov 0   ;;  %v1507_v33 = vmov 1983009808   ;;  %v299_v35 = vlaneseq  ;;  %s2127_s1 = inlined_call_operand.vmem [shape: bf16[128,512], index: 1, kind: input, shape index: {}]   ;;  %s2128_s0 = inlined_call_operand.vmem [shape: f32[8,2,512], index: 0, kind: input, shape index: {}]   ;;  %s2129_s2 = inlined_call_operand.vmem [shape: f32[8,2,128], index: 2, kind: output, shape index: {0}]   ;;  %s2130_s4 = inlined_call_operand.vmem [shape: f32[2,128], index: 4, kind: output, shape index: {2}]   ;;  %s2131_s3 = inlined_call_operand.vmem [shape: f32[2,128], index: 3, kind: output, shape index: {1}]  }
   0x1   :  { %v1536_v0 = vld [vmem:[%s2127_s1 + $0xe4] ss:$16 sps:$4 sm:$0xff]   ;;  %240 = vmatprep.mubr.bf16.mxu0 %v1506_v1  ;;  %281 = vmatprep.mubr.bf16.mxu1 %v1506_v1  ;;  %v1543_v2 = vld [vmem:[%s2127_s1 + $0xec] ss:$16 sps:$4 sm:$0xff]   ;;  %v1549_v3 = vld [vmem:[%s2127_s1 + $0xe0] ss:$16 sps:$4 sm:$0xff]   ;;  %v297_v34 = vunpack.c.l.s4 %v1507_v33 }
   0x2   :  { %208 = vmatprep.subr.bf16.mxu0 %v1536_v0  ;;  %v1554_v4 = vld [vmem:[%s2127_s1 + $0xe8] ss:$16 sps:$4 sm:$0xff]   ;;  %249 = vmatprep.subr.bf16.mxu1 %v1543_v2  ;;  %v1560_v5 = vld [vmem:[%s2127_s1 + $0xc4] ss:$16 sps:$4 sm:$0xff]   ;;  %v1567_v6 = vld [vmem:[%s2127_s1 + $0xcc] ss:$16 sps:$4 sm:$0xff]  }
   0x3   :  { %209 = vmatpush1.bf16.msra.mxu0 %v1549_v3  ;;  %250 = vmatpush1.bf16.msra.mxu1 %v1554_v4  ;;  %v1572_v7 = vld [vmem:[%s2127_s1 + $0xc0] ss:$16 sps:$4 sm:$0xff]   ;;  %v1578_v8 = vld [vmem:[%s2127_s1 + $0xc8] ss:$16 sps:$4 sm:$0xff]   ;;  %v1584_v9 = vld [vmem:[%s2127_s1 + $0xa4] ss:$16 sps:$4 sm:$0xff]   ;;  %v298_v36 = vunpack.c.0.s8 %v297_v34 }
   0x4   :  { %210 = vmatprep.subr.bf16.mxu0 %v1560_v5  ;;  %251 = vmatprep.subr.bf16.mxu1 %v1567_v6  ;;  %v1589_v10 = vld [vmem:[%s2127_s1 + $0xac] ss:$16 sps:$4 sm:$0xff]   ;;  %v1594_v11 = vld [vmem:[%s2127_s1 + $0xa0] ss:$16 sps:$4 sm:$0xff]   ;;  %v1599_v12 = vld [vmem:[%s2127_s1 + $0xa8] ss:$16 sps:$4 sm:$0xff]  }
   0x5   :  { %v1606_v13 = vld [vmem:[%s2127_s1 + $0x84] ss:$16 sps:$4 sm:$0xff]   ;;  %v1613_v14 = vld [vmem:[%s2127_s1 + $0x8c] ss:$16 sps:$4 sm:$0xff]   ;;  %v1618_v15 = vld [vmem:[%s2127_s1 + $0x80] ss:$16 sps:$4 sm:$0xff]  }
   0x6   :  { %v1625_v16 = vld [vmem:[%s2127_s1 + $0x88] ss:$16 sps:$4 sm:$0xff]   ;;  %v1630_v17 = vld [vmem:[%s2127_s1 + $0x64] ss:$16 sps:$4 sm:$0xff]   ;;  %v1637_v18 = vld [vmem:[%s2127_s1 + $0x6c] ss:$16 sps:$4 sm:$0xff]  }
   0x7   :  { %211 = vmatpush1.bf16.msra.mxu0 %v1572_v7  ;;  %252 = vmatpush1.bf16.msra.mxu1 %v1578_v8  ;;  %v1642_v19 = vld [vmem:[%s2127_s1 + $0x60] ss:$16 sps:$4 sm:$0xff]   ;;  %v1647_v20 = vld [vmem:[%s2127_s1 + $0x68] ss:$16 sps:$4 sm:$0xff]   ;;  %v1654_v21 = vld [vmem:[%s2127_s1 + $0x44] ss:$16 sps:$4 sm:$0xff]  }
   0x8   :  { %212 = vmatprep.subr.bf16.mxu0 %v1584_v9  ;;  %253 = vmatprep.subr.bf16.mxu1 %v1589_v10  ;;  %v1661_v22 = vld [vmem:[%s2127_s1 + $0x4c] ss:$16 sps:$4 sm:$0xff]   ;;  %v1668_v23 = vld [vmem:[%s2127_s1 + $0x40] ss:$16 sps:$4 sm:$0xff]   ;;  %v1673_v24 = vld [vmem:[%s2127_s1 + $0x48] ss:$16 sps:$4 sm:$0xff]  }
   0x9   :  { %v1680_v25 = vld [vmem:[%s2127_s1 + $0x24] ss:$16 sps:$4 sm:$0xff]   ;;  %v1685_v26 = vld [vmem:[%s2127_s1 + $0x2c] ss:$16 sps:$4 sm:$0xff]   ;;  %v1692_v27 = vld [vmem:[%s2127_s1 + $0x20] ss:$16 sps:$4 sm:$0xff]  }
   0xa   :  { %v1697_v28 = vld [vmem:[%s2127_s1 + $0x28] ss:$16 sps:$4 sm:$0xff]   ;;  %v1704_v29 = vld [vmem:[%s2127_s1 + $0x4] ss:$16 sps:$4 sm:$0xff]   ;;  %v1709_v30 = vld [vmem:[%s2127_s1 + $0xc] ss:$16 sps:$4 sm:$0xff]  }
   0xb   :  { %213 = vmatpush1.bf16.msra.mxu0 %v1594_v11  ;;  %254 = vmatpush1.bf16.msra.mxu1 %v1599_v12  ;;  %v1716_v31 = vld [vmem:[%s2127_s1] ss:$16 sps:$4 sm:$0xff]   ;;  %v1721_v32 = vld [vmem:[%s2127_s1 + $0x8] ss:$16 sps:$4 sm:$0xff]   ;;  %v300_v37 = vshrl.u32 %v299_v35, 7 }
   0xc   :  { %214 = vmatprep.subr.bf16.mxu0 %v1606_v13  ;;  %255 = vmatprep.subr.bf16.mxu1 %v1613_v14  ;;  %v47_v49 = vld [vmem:[%s2128_s0] sm:$0xff] }
   0xd   :  { %v1765_v40 = vsub.s32 %v298_v36, %v300_v37 }
   0xf   :  { %215 = vmatpush1.bf16.msra.mxu0 %v1618_v15  ;;  %256 = vmatpush1.bf16.msra.mxu1 %v1625_v16 }
  0x10   :  { %216 = vmatprep.subr.bf16.mxu0 %v1630_v17  ;;  %257 = vmatprep.subr.bf16.mxu1 %v1637_v18 }
  0x13   :  { %217 = vmatpush1.bf16.msra.mxu0 %v1642_v19  ;;  %258 = vmatpush1.bf16.msra.mxu1 %v1647_v20 }
  0x14   :  { %218 = vmatprep.subr.bf16.mxu0 %v1654_v21  ;;  %259 = vmatprep.subr.bf16.mxu1 %v1661_v22 }
  0x17   :  { %219 = vmatpush1.bf16.msra.mxu0 %v1668_v23  ;;  %260 = vmatpush1.bf16.msra.mxu1 %v1673_v24 }
  0x18   :  { %220 = vmatprep.subr.bf16.mxu0 %v1680_v25  ;;  %261 = vmatprep.subr.bf16.mxu1 %v1685_v26 }
  0x1b   :  { %221 = vmatpush1.bf16.msra.mxu0 %v1692_v27  ;;  %262 = vmatpush1.bf16.msra.mxu1 %v1697_v28 }
  0x1c   :  { %222 = vmatprep.subr.bf16.mxu0 %v1704_v29  ;;  %263 = vmatprep.subr.bf16.mxu1 %v1709_v30 }
  0x1f   :  { %223 = vmatpush1.bf16.msra.mxu0 %v1716_v31  ;;  %264 = vmatpush1.bf16.msra.mxu1 %v1721_v32 }
  0x20   :  { %342 = vmatprep.subr.bf16.mxu0 %v1536_v0  ;;  %383 = vmatprep.subr.bf16.mxu1 %v1543_v2 }
  0x22   :  { %241 = vmatmul.mubr.bf16.vlgmr.msra.gmra.mxu0 %v1506_v1  ;;  %282 = vmatmul.mubr.bf16.vlgmr.msra.gmra.mxu1 %v1506_v1 }
  0x23   :  { %343 = vmatpush1.bf16.msra.mxu0 %v1549_v3  ;;  %384 = vmatpush1.bf16.msra.mxu1 %v1554_v4 }
  0x24   :  { %344 = vmatprep.subr.bf16.mxu0 %v1560_v5  ;;  %385 = vmatprep.subr.bf16.mxu1 %v1567_v6 }
  0x25   :  { %374 = vmatprep.mubr.bf16.mxu0 %v1506_v1  ;;  %415 = vmatprep.mubr.bf16.mxu1 %v1506_v1 }
  0x27   :  { %345 = vmatpush1.bf16.msra.mxu0 %v1572_v7  ;;  %386 = vmatpush1.bf16.msra.mxu1 %v1578_v8 }
  0x28   :  { %346 = vmatprep.subr.bf16.mxu0 %v1584_v9  ;;  %387 = vmatprep.subr.bf16.mxu1 %v1589_v10 }
  0x2b   :  { %347 = vmatpush1.bf16.msra.mxu0 %v1594_v11  ;;  %388 = vmatpush1.bf16.msra.mxu1 %v1599_v12 }
  0x2c   :  { %348 = vmatprep.subr.bf16.mxu0 %v1606_v13  ;;  %389 = vmatprep.subr.bf16.mxu1 %v1613_v14 }
  0x2f   :  { %349 = vmatpush1.bf16.msra.mxu0 %v1618_v15  ;;  %390 = vmatpush1.bf16.msra.mxu1 %v1625_v16 }
  0x30   :  { %350 = vmatprep.subr.bf16.mxu0 %v1630_v17  ;;  %391 = vmatprep.subr.bf16.mxu1 %v1637_v18 }
  0x33   :  { %351 = vmatpush1.bf16.msra.mxu0 %v1642_v19  ;;  %392 = vmatpush1.bf16.msra.mxu1 %v1647_v20 }
  0x34   :  { %352 = vmatprep.subr.bf16.mxu0 %v1654_v21  ;;  %393 = vmatprep.subr.bf16.mxu1 %v1661_v22 }
  0x37   :  { %353 = vmatpush1.bf16.msra.mxu0 %v1668_v23  ;;  %394 = vmatpush1.bf16.msra.mxu1 %v1673_v24 }
  0x38   :  { %354 = vmatprep.subr.bf16.mxu0 %v1680_v25  ;;  %395 = vmatprep.subr.bf16.mxu1 %v1685_v26 }
  0x3b   :  { %355 = vmatpush1.bf16.msra.mxu0 %v1692_v27  ;;  %396 = vmatpush1.bf16.msra.mxu1 %v1697_v28 }
  0x3c   :  { %356 = vmatprep.subr.bf16.mxu0 %v1704_v29  ;;  %397 = vmatprep.subr.bf16.mxu1 %v1709_v30 }
  0x3f   :  { %357 = vmatpush1.bf16.msra.mxu0 %v1716_v31  ;;  %398 = vmatpush1.bf16.msra.mxu1 %v1721_v32 }
  0x40   :  { %477 = vmatprep.subr.bf16.mxu0 %v1536_v0  ;;  %518 = vmatprep.subr.bf16.mxu1 %v1543_v2 }
  0xe2   :  { %v242_v38 = vpop.f32.mrf.mxu0  ;;  %v283_v39 = vpop.f32.mrf.mxu1 }
  0xe4   :  { %v244_v41 = vpop.f32.mrf.mxu0  ;;  %v285_v42 = vpop.f32.mrf.mxu1 }
  0xe5   :  { %v294_v43 = vcombine.low %v242_v38, %v244_v41  ;;  %v295_v44 = vcombine.low %v283_v39, %v285_v42 }
  0xe6   :  { %v246_v45 = vpop.f32.mrf.mxu0  ;;  %v287_v46 = vpop.f32.mrf.mxu1 }
  0xe7   :  { %v302_v47 = vrot.slane %v294_v43, %v1765_v40  ;;  %v309_v48 = vrot.slane %v295_v44, %v1765_v40 }
  0xe8   :  { %v247_v50 = vpop.f32.mrf.mxu0  ;;  %v288_v51 = vpop.f32.mrf.mxu1 }
  0xe9   :  { %v310_v52 = vcombine.low %v302_v47, %v309_v48 }
  0xeb   :  { %v312_v53 = vadd.f32 %v310_v52, %v47_v49 }
  0xed   :  { %v313_v54 = vmul.f32 0.5, %v312_v53  ;;  %v318_v55 = vrot.slane %v312_v53, 2  ;;  %v324_v57 = vrot.slane %v312_v53, 4  ;;  %v327_v58 = vrot.slane %v312_v53, 6 }
  0xef   :  { %1394 = vtanh.f32 %v313_v54  ;;  %v320_v56 = vmul.f32 0.5, %v318_v55  ;;  %v329_v59 = vmul.f32 0.5, %v327_v58 }
  0xf1   :  { %1396 = vtanh.f32 %v320_v56  ;;  %v1330_v56 = vld [vmem:[%s2128_s0 + $0x8] sm:$0xff] }
  0xf2   :  { %1398 = vtanh.f32 %v324_v57 }
  0xf3   :  { %1400 = vtanh.f32 %v329_v59 }
  0xfc   :  { %v1395_v60 = vpop.eup %1394 }
  0xfd   :  { %v315_v61 = vadd.f32 1.0, %v1395_v60 }
  0xfe   :  { %v1397_v62 = vpop.eup %1396 }
  0xff   :  { %v316_v63 = vmul.f32 0.5, %v315_v61  ;;  %v322_v33 = vadd.f32 1.0, %v1397_v62  ;;  %v1399_v35 = vpop.eup %1398 }
 0x100   :  { %v1401_v39 = vpop.eup %1400 }
 0x101   :  { %v323_v34 = vmul.f32 0.5, %v322_v33  ;;  %v334_v37 = vmul.f32 %v1399_v35, %v316_v63  ;;  %v331_v41 = vadd.f32 1.0, %v1401_v39 }
 0x103   :  { %v333_v36 = vmul.f32 0.0, %v323_v34  ;;  %v332_v42 = vmul.f32 0.5, %v331_v41 }
 0x105   :  { %v1772_v38 = vadd.f32 %v334_v37, %v333_v36 }
 0x107   :  { %1402 = vtanh.f32 %v1772_v38 }
 0x114   :  { %v1403_v43 = vpop.eup %1402 }
 0x115   :  { %v337_v44 = vmul.f32 %v1403_v43, %v332_v42 }
 0x117   :  { %338 = vst [vmem:[%s2129_s2] sm:$0x3] %v337_v44  ;;  %v341_v45 = vpack.c.bf16 %v337_v44, %v337_v44 }
 0x119   :  { %375 = vmatmul.mubr.bf16.vlgmr.msra.gmra.mxu0 %v341_v45  ;;  %416 = vmatmul.mubr.bf16.vlgmr.msra.gmra.mxu1 %v341_v45 }
 0x11a   :  { %478 = vmatpush1.bf16.msra.mxu0 %v1549_v3  ;;  %519 = vmatpush1.bf16.msra.mxu1 %v1554_v4 }
 0x11b   :  { %479 = vmatprep.subr.bf16.mxu0 %v1560_v5  ;;  %520 = vmatprep.subr.bf16.mxu1 %v1567_v6 }
 0x11c   :  { %509 = vmatprep.mubr.bf16.mxu0 %v1506_v1  ;;  %550 = vmatprep.mubr.bf16.mxu1 %v1506_v1 }
 0x11e   :  { %480 = vmatpush1.bf16.msra.mxu0 %v1572_v7  ;;  %521 = vmatpush1.bf16.msra.mxu1 %v1578_v8 }
 0x11f   :  { %481 = vmatprep.subr.bf16.mxu0 %v1584_v9  ;;  %522 = vmatprep.subr.bf16.mxu1 %v1589_v10 }
 0x122   :  { %482 = vmatpush1.bf16.msra.mxu0 %v1594_v11  ;;  %523 = vmatpush1.bf16.msra.mxu1 %v1599_v12 }
 0x123   :  { %483 = vmatprep.subr.bf16.mxu0 %v1606_v13  ;;  %524 = vmatprep.subr.bf16.mxu1 %v1613_v14 }
 0x126   :  { %484 = vmatpush1.bf16.msra.mxu0 %v1618_v15  ;;  %525 = vmatpush1.bf16.msra.mxu1 %v1625_v16 }
 0x127   :  { %485 = vmatprep.subr.bf16.mxu0 %v1630_v17  ;;  %526 = vmatprep.subr.bf16.mxu1 %v1637_v18 }
 0x12a   :  { %486 = vmatpush1.bf16.msra.mxu0 %v1642_v19  ;;  %527 = vmatpush1.bf16.msra.mxu1 %v1647_v20 }
 0x12b   :  { %487 = vmatprep.subr.bf16.mxu0 %v1654_v21  ;;  %528 = vmatprep.subr.bf16.mxu1 %v1661_v22 }
 0x12e   :  { %488 = vmatpush1.bf16.msra.mxu0 %v1668_v23  ;;  %529 = vmatpush1.bf16.msra.mxu1 %v1673_v24 }
 0x12f   :  { %489 = vmatprep.subr.bf16.mxu0 %v1680_v25  ;;  %530 = vmatprep.subr.bf16.mxu1 %v1685_v26 }
 0x132   :  { %490 = vmatpush1.bf16.msra.mxu0 %v1692_v27  ;;  %531 = vmatpush1.bf16.msra.mxu1 %v1697_v28 }
 0x133   :  { %491 = vmatprep.subr.bf16.mxu0 %v1704_v29  ;;  %532 = vmatprep.subr.bf16.mxu1 %v1709_v30 }
 0x136   :  { %492 = vmatpush1.bf16.msra.mxu0 %v1716_v31  ;;  %533 = vmatpush1.bf16.msra.mxu1 %v1721_v32 }
 0x137   :  { %612 = vmatprep.subr.bf16.mxu0 %v1536_v0  ;;  %653 = vmatprep.subr.bf16.mxu1 %v1543_v2 }
 0x1d9   :  { %v376_v46 = vpop.f32.mrf.mxu0  ;;  %v417_v47 = vpop.f32.mrf.mxu1 }
 0x1db   :  { %v378_v48 = vpop.f32.mrf.mxu0  ;;  %v419_v49 = vpop.f32.mrf.mxu1 }
 0x1dc   :  { %v428_v50 = vcombine.low %v376_v46, %v378_v48  ;;  %v429_v51 = vcombine.low %v417_v47, %v419_v49 }
 0x1dd   :  { %v380_v52 = vpop.f32.mrf.mxu0  ;;  %v421_v53 = vpop.f32.mrf.mxu1 }
 0x1de   :  { %v436_v54 = vrot.slane %v428_v50, %v1765_v40  ;;  %v443_v55 = vrot.slane %v429_v51, %v1765_v40 }
 0x1df   :  { %v381_v57 = vpop.f32.mrf.mxu0  ;;  %v422_v58 = vpop.f32.mrf.mxu1 }
 0x1e0   :  { %v444_v59 = vcombine.low %v436_v54, %v443_v55 }
 0x1e2   :  { %v446_v60 = vadd.f32 %v1330_v56, %v444_v59 }
 0x1e4   :  { %v447_v61 = vmul.f32 0.5, %v446_v60  ;;  %v452_v62 = vrot.slane %v446_v60, 2  ;;  %v458_v33 = vrot.slane %v446_v60, 4  ;;  %v461_v34 = vrot.slane %v446_v60, 6 }
 0x1e6   :  { %1404 = vtanh.f32 %v447_v61  ;;  %v454_v63 = vmul.f32 0.5, %v452_v62  ;;  %v463_v35 = vmul.f32 0.5, %v461_v34 }
 0x1e8   :  { %1406 = vtanh.f32 %v454_v63  ;;  %v1332_v63 = vld [vmem:[%s2128_s0 + $0x10] sm:$0xff] }
 0x1e9   :  { %1408 = vtanh.f32 %v458_v33 }
 0x1ea   :  { %1410 = vtanh.f32 %v463_v35 }
 0x1f3   :  { %v1405_v36 = vpop.eup %1404 }
 0x1f4   :  { %v449_v37 = vadd.f32 1.0, %v1405_v36 }
 0x1f5   :  { %v1407_v39 = vpop.eup %1406 }
 0x1f6   :  { %v450_v41 = vmul.f32 0.5, %v449_v37  ;;  %v456_v42 = vadd.f32 1.0, %v1407_v39  ;;  %v1409_v44 = vpop.eup %1408 }
 0x1f7   :  { %v1411_v48 = vpop.eup %1410 }
 0x1f8   :  { %v457_v43 = vmul.f32 0.5, %v456_v42  ;;  %v468_v46 = vmul.f32 %v1409_v44, %v450_v41  ;;  %v465_v49 = vadd.f32 1.0, %v1411_v48 }
 0x1fa   :  { %v467_v45 = vmul.f32 %v457_v43, %v1772_v38  ;;  %v466_v50 = vmul.f32 0.5, %v465_v49 }
 0x1fc   :  { %v1818_v47 = vadd.f32 %v468_v46, %v467_v45 }
 0x1fe   :  { %1412 = vtanh.f32 %v1818_v47 }
 0x20b   :  { %v1413_v51 = vpop.eup %1412 }
 0x20c   :  { %v471_v52 = vmul.f32 %v1413_v51, %v466_v50 }
 0x20e   :  { %1331 = vst [vmem:[%s2129_s2 + $0x2] sm:$0x3] %v471_v52  ;;  %v476_v53 = vpack.c.bf16 %v471_v52, %v471_v52 }
 0x210   :  { %510 = vmatmul.mubr.bf16.vlgmr.msra.gmra.mxu0 %v476_v53  ;;  %551 = vmatmul.mubr.bf16.vlgmr.msra.gmra.mxu1 %v476_v53 }
 0x211   :  { %613 = vmatpush1.bf16.msra.mxu0 %v1549_v3  ;;  %654 = vmatpush1.bf16.msra.mxu1 %v1554_v4 }
 0x212   :  { %614 = vmatprep.subr.bf16.mxu0 %v1560_v5  ;;  %655 = vmatprep.subr.bf16.mxu1 %v1567_v6 }
 0x213   :  { %644 = vmatprep.mubr.bf16.mxu0 %v1506_v1  ;;  %685 = vmatprep.mubr.bf16.mxu1 %v1506_v1 }
 0x215   :  { %615 = vmatpush1.bf16.msra.mxu0 %v1572_v7  ;;  %656 = vmatpush1.bf16.msra.mxu1 %v1578_v8 }
 0x216   :  { %616 = vmatprep.subr.bf16.mxu0 %v1584_v9  ;;  %657 = vmatprep.subr.bf16.mxu1 %v1589_v10 }
 0x219   :  { %617 = vmatpush1.bf16.msra.mxu0 %v1594_v11  ;;  %658 = vmatpush1.bf16.msra.mxu1 %v1599_v12 }
 0x21a   :  { %618 = vmatprep.subr.bf16.mxu0 %v1606_v13  ;;  %659 = vmatprep.subr.bf16.mxu1 %v1613_v14 }
 0x21d   :  { %619 = vmatpush1.bf16.msra.mxu0 %v1618_v15  ;;  %660 = vmatpush1.bf16.msra.mxu1 %v1625_v16 }
 0x21e   :  { %620 = vmatprep.subr.bf16.mxu0 %v1630_v17  ;;  %661 = vmatprep.subr.bf16.mxu1 %v1637_v18 }
 0x221   :  { %621 = vmatpush1.bf16.msra.mxu0 %v1642_v19  ;;  %662 = vmatpush1.bf16.msra.mxu1 %v1647_v20 }
 0x222   :  { %622 = vmatprep.subr.bf16.mxu0 %v1654_v21  ;;  %663 = vmatprep.subr.bf16.mxu1 %v1661_v22 }
 0x225   :  { %623 = vmatpush1.bf16.msra.mxu0 %v1668_v23  ;;  %664 = vmatpush1.bf16.msra.mxu1 %v1673_v24 }
 0x226   :  { %624 = vmatprep.subr.bf16.mxu0 %v1680_v25  ;;  %665 = vmatprep.subr.bf16.mxu1 %v1685_v26 }
 0x229   :  { %625 = vmatpush1.bf16.msra.mxu0 %v1692_v27  ;;  %666 = vmatpush1.bf16.msra.mxu1 %v1697_v28 }
 0x22a   :  { %626 = vmatprep.subr.bf16.mxu0 %v1704_v29  ;;  %667 = vmatprep.subr.bf16.mxu1 %v1709_v30 }
 0x22d   :  { %627 = vmatpush1.bf16.msra.mxu0 %v1716_v31  ;;  %668 = vmatpush1.bf16.msra.mxu1 %v1721_v32 }
 0x22e   :  { %747 = vmatprep.subr.bf16.mxu0 %v1536_v0  ;;  %788 = vmatprep.subr.bf16.mxu1 %v1543_v2 }
 0x2d0   :  { %v511_v38 = vpop.f32.mrf.mxu0  ;;  %v552_v54 = vpop.f32.mrf.mxu1 }
 0x2d2   :  { %v513_v55 = vpop.f32.mrf.mxu0  ;;  %v554_v56 = vpop.f32.mrf.mxu1 }
 0x2d3   :  { %v563_v57 = vcombine.low %v511_v38, %v513_v55  ;;  %v564_v58 = vcombine.low %v552_v54, %v554_v56 }
 0x2d4   :  { %v515_v59 = vpop.f32.mrf.mxu0  ;;  %v556_v60 = vpop.f32.mrf.mxu1 }
 0x2d5   :  { %v571_v61 = vrot.slane %v563_v57, %v1765_v40  ;;  %v578_v62 = vrot.slane %v564_v58, %v1765_v40 }
 0x2d6   :  { %v516_v33 = vpop.f32.mrf.mxu0  ;;  %v557_v34 = vpop.f32.mrf.mxu1 }
 0x2d7   :  { %v579_v35 = vcombine.low %v571_v61, %v578_v62 }
 0x2d9   :  { %v581_v36 = vadd.f32 %v1332_v63, %v579_v35 }
 0x2db   :  { %v582_v37 = vmul.f32 0.5, %v581_v36  ;;  %v587_v39 = vrot.slane %v581_v36, 2  ;;  %v593_v42 = vrot.slane %v581_v36, 4  ;;  %v596_v43 = vrot.slane %v581_v36, 6 }
 0x2dd   :  { %1414 = vtanh.f32 %v582_v37  ;;  %v589_v41 = vmul.f32 0.5, %v587_v39  ;;  %v598_v44 = vmul.f32 0.5, %v596_v43 }
 0x2df   :  { %1416 = vtanh.f32 %v589_v41  ;;  %v1334_v41 = vld [vmem:[%s2128_s0 + $0x18] sm:$0xff] }
 0x2e0   :  { %1418 = vtanh.f32 %v593_v42 }
 0x2e1   :  { %1420 = vtanh.f32 %v598_v44 }
 0x2ea   :  { %v1415_v45 = vpop.eup %1414 }
 0x2eb   :  { %v584_v46 = vadd.f32 1.0, %v1415_v45 }
 0x2ec   :  { %v1417_v48 = vpop.eup %1416 }
 0x2ed   :  { %v585_v49 = vmul.f32 0.5, %v584_v46  ;;  %v591_v50 = vadd.f32 1.0, %v1417_v48  ;;  %v1419_v52 = vpop.eup %1418 }
 0x2ee   :  { %v1421_v55 = vpop.eup %1420 }
 0x2ef   :  { %v592_v51 = vmul.f32 0.5, %v591_v50  ;;  %v603_v38 = vmul.f32 %v1419_v52, %v585_v49  ;;  %v600_v56 = vadd.f32 1.0, %v1421_v55 }
 0x2f1   :  { %v602_v53 = vmul.f32 %v592_v51, %v1818_v47  ;;  %v601_v57 = vmul.f32 0.5, %v600_v56 }
 0x2f3   :  { %v1864_v54 = vadd.f32 %v603_v38, %v602_v53 }
 0x2f5   :  { %1422 = vtanh.f32 %v1864_v54 }
 0x302   :  { %v1423_v58 = vpop.eup %1422 }
 0x303   :  { %v606_v59 = vmul.f32 %v1423_v58, %v601_v57 }
 0x305   :  { %1333 = vst [vmem:[%s2129_s2 + $0x4] sm:$0x3] %v606_v59  ;;  %v611_v60 = vpack.c.bf16 %v606_v59, %v606_v59 }
 0x307   :  { %645 = vmatmul.mubr.bf16.vlgmr.msra.gmra.mxu0 %v611_v60  ;;  %686 = vmatmul.mubr.bf16.vlgmr.msra.gmra.mxu1 %v611_v60 }
 0x308   :  { %748 = vmatpush1.bf16.msra.mxu0 %v1549_v3  ;;  %789 = vmatpush1.bf16.msra.mxu1 %v1554_v4 }
 0x309   :  { %749 = vmatprep.subr.bf16.mxu0 %v1560_v5  ;;  %790 = vmatprep.subr.bf16.mxu1 %v1567_v6 }
 0x30a   :  { %779 = vmatprep.mubr.bf16.mxu0 %v1506_v1  ;;  %820 = vmatprep.mubr.bf16.mxu1 %v1506_v1 }
 0x30c   :  { %750 = vmatpush1.bf16.msra.mxu0 %v1572_v7  ;;  %791 = vmatpush1.bf16.msra.mxu1 %v1578_v8 }
 0x30d   :  { %751 = vmatprep.subr.bf16.mxu0 %v1584_v9  ;;  %792 = vmatprep.subr.bf16.mxu1 %v1589_v10 }
 0x310   :  { %752 = vmatpush1.bf16.msra.mxu0 %v1594_v11  ;;  %793 = vmatpush1.bf16.msra.mxu1 %v1599_v12 }
 0x311   :  { %753 = vmatprep.subr.bf16.mxu0 %v1606_v13  ;;  %794 = vmatprep.subr.bf16.mxu1 %v1613_v14 }
 0x314   :  { %754 = vmatpush1.bf16.msra.mxu0 %v1618_v15  ;;  %795 = vmatpush1.bf16.msra.mxu1 %v1625_v16 }
 0x315   :  { %755 = vmatprep.subr.bf16.mxu0 %v1630_v17  ;;  %796 = vmatprep.subr.bf16.mxu1 %v1637_v18 }
 0x318   :  { %756 = vmatpush1.bf16.msra.mxu0 %v1642_v19  ;;  %797 = vmatpush1.bf16.msra.mxu1 %v1647_v20 }
 0x319   :  { %757 = vmatprep.subr.bf16.mxu0 %v1654_v21  ;;  %798 = vmatprep.subr.bf16.mxu1 %v1661_v22 }
 0x31c   :  { %758 = vmatpush1.bf16.msra.mxu0 %v1668_v23  ;;  %799 = vmatpush1.bf16.msra.mxu1 %v1673_v24 }
 0x31d   :  { %759 = vmatprep.subr.bf16.mxu0 %v1680_v25  ;;  %800 = vmatprep.subr.bf16.mxu1 %v1685_v26 }
 0x320   :  { %760 = vmatpush1.bf16.msra.mxu0 %v1692_v27  ;;  %801 = vmatpush1.bf16.msra.mxu1 %v1697_v28 }
 0x321   :  { %761 = vmatprep.subr.bf16.mxu0 %v1704_v29  ;;  %802 = vmatprep.subr.bf16.mxu1 %v1709_v30 }
 0x324   :  { %762 = vmatpush1.bf16.msra.mxu0 %v1716_v31  ;;  %803 = vmatpush1.bf16.msra.mxu1 %v1721_v32 }
 0x325   :  { %882 = vmatprep.subr.bf16.mxu0 %v1536_v0  ;;  %923 = vmatprep.subr.bf16.mxu1 %v1543_v2 }
 0x3c7   :  { %v646_v47 = vpop.f32.mrf.mxu0  ;;  %v687_v61 = vpop.f32.mrf.mxu1 }
 0x3c9   :  { %v648_v62 = vpop.f32.mrf.mxu0  ;;  %v689_v63 = vpop.f32.mrf.mxu1 }
 0x3ca   :  { %v698_v33 = vcombine.low %v646_v47, %v648_v62  ;;  %v699_v34 = vcombine.low %v687_v61, %v689_v63 }
 0x3cb   :  { %v650_v35 = vpop.f32.mrf.mxu0  ;;  %v691_v36 = vpop.f32.mrf.mxu1 }
 0x3cc   :  { %v706_v37 = vrot.slane %v698_v33, %v1765_v40  ;;  %v713_v39 = vrot.slane %v699_v34, %v1765_v40 }
 0x3cd   :  { %v651_v42 = vpop.f32.mrf.mxu0  ;;  %v692_v43 = vpop.f32.mrf.mxu1 }
 0x3ce   :  { %v714_v44 = vcombine.low %v706_v37, %v713_v39 }
 0x3d0   :  { %v716_v45 = vadd.f32 %v1334_v41, %v714_v44 }
 0x3d2   :  { %v717_v46 = vmul.f32 0.5, %v716_v45  ;;  %v722_v48 = vrot.slane %v716_v45, 2  ;;  %v728_v50 = vrot.slane %v716_v45, 4  ;;  %v731_v51 = vrot.slane %v716_v45, 6 }
 0x3d4   :  { %1424 = vtanh.f32 %v717_v46  ;;  %v724_v49 = vmul.f32 0.5, %v722_v48  ;;  %v733_v52 = vmul.f32 0.5, %v731_v51 }
 0x3d6   :  { %1426 = vtanh.f32 %v724_v49  ;;  %v1336_v49 = vld [vmem:[%s2128_s0 + $0x20] sm:$0xff] }
 0x3d7   :  { %1428 = vtanh.f32 %v728_v50 }
 0x3d8   :  { %1430 = vtanh.f32 %v733_v52 }
 0x3e1   :  { %v1425_v53 = vpop.eup %1424 }
 0x3e2   :  { %v719_v38 = vadd.f32 1.0, %v1425_v53 }
 0x3e3   :  { %v1427_v55 = vpop.eup %1426 }
 0x3e4   :  { %v720_v56 = vmul.f32 0.5, %v719_v38  ;;  %v726_v57 = vadd.f32 1.0, %v1427_v55  ;;  %v1429_v59 = vpop.eup %1428 }
 0x3e5   :  { %v1431_v62 = vpop.eup %1430 }
 0x3e6   :  { %v727_v58 = vmul.f32 0.5, %v726_v57  ;;  %v738_v47 = vmul.f32 %v1429_v59, %v720_v56  ;;  %v735_v63 = vadd.f32 1.0, %v1431_v62 }
 0x3e8   :  { %v737_v60 = vmul.f32 %v727_v58, %v1864_v54  ;;  %v736_v33 = vmul.f32 0.5, %v735_v63 }
 0x3ea   :  { %v1910_v61 = vadd.f32 %v738_v47, %v737_v60 }
 0x3ec   :  { %1432 = vtanh.f32 %v1910_v61 }
 0x3f9   :  { %v1433_v34 = vpop.eup %1432 }
 0x3fa   :  { %v741_v35 = vmul.f32 %v1433_v34, %v736_v33 }
 0x3fc   :  { %1335 = vst [vmem:[%s2129_s2 + $0x6] sm:$0x3] %v741_v35  ;;  %v746_v36 = vpack.c.bf16 %v741_v35, %v741_v35 }
 0x3fe   :  { %780 = vmatmul.mubr.bf16.vlgmr.msra.gmra.mxu0 %v746_v36  ;;  %821 = vmatmul.mubr.bf16.vlgmr.msra.gmra.mxu1 %v746_v36 }
 0x3ff   :  { %883 = vmatpush1.bf16.msra.mxu0 %v1549_v3  ;;  %924 = vmatpush1.bf16.msra.mxu1 %v1554_v4 }
 0x400   :  { %884 = vmatprep.subr.bf16.mxu0 %v1560_v5  ;;  %925 = vmatprep.subr.bf16.mxu1 %v1567_v6 }
 0x401   :  { %914 = vmatprep.mubr.bf16.mxu0 %v1506_v1  ;;  %955 = vmatprep.mubr.bf16.mxu1 %v1506_v1 }
 0x403   :  { %885 = vmatpush1.bf16.msra.mxu0 %v1572_v7  ;;  %926 = vmatpush1.bf16.msra.mxu1 %v1578_v8 }
 0x404   :  { %886 = vmatprep.subr.bf16.mxu0 %v1584_v9  ;;  %927 = vmatprep.subr.bf16.mxu1 %v1589_v10 }
 0x407   :  { %887 = vmatpush1.bf16.msra.mxu0 %v1594_v11  ;;  %928 = vmatpush1.bf16.msra.mxu1 %v1599_v12 }
 0x408   :  { %888 = vmatprep.subr.bf16.mxu0 %v1606_v13  ;;  %929 = vmatprep.subr.bf16.mxu1 %v1613_v14 }
 0x40b   :  { %889 = vmatpush1.bf16.msra.mxu0 %v1618_v15  ;;  %930 = vmatpush1.bf16.msra.mxu1 %v1625_v16 }
 0x40c   :  { %890 = vmatprep.subr.bf16.mxu0 %v1630_v17  ;;  %931 = vmatprep.subr.bf16.mxu1 %v1637_v18 }
 0x40f   :  { %891 = vmatpush1.bf16.msra.mxu0 %v1642_v19  ;;  %932 = vmatpush1.bf16.msra.mxu1 %v1647_v20 }
 0x410   :  { %892 = vmatprep.subr.bf16.mxu0 %v1654_v21  ;;  %933 = vmatprep.subr.bf16.mxu1 %v1661_v22 }
 0x413   :  { %893 = vmatpush1.bf16.msra.mxu0 %v1668_v23  ;;  %934 = vmatpush1.bf16.msra.mxu1 %v1673_v24 }
 0x414   :  { %894 = vmatprep.subr.bf16.mxu0 %v1680_v25  ;;  %935 = vmatprep.subr.bf16.mxu1 %v1685_v26 }
 0x417   :  { %895 = vmatpush1.bf16.msra.mxu0 %v1692_v27  ;;  %936 = vmatpush1.bf16.msra.mxu1 %v1697_v28 }
 0x418   :  { %896 = vmatprep.subr.bf16.mxu0 %v1704_v29  ;;  %937 = vmatprep.subr.bf16.mxu1 %v1709_v30 }
 0x41b   :  { %897 = vmatpush1.bf16.msra.mxu0 %v1716_v31  ;;  %938 = vmatpush1.bf16.msra.mxu1 %v1721_v32 }
 0x41c   :  { %1017 = vmatprep.subr.bf16.mxu0 %v1536_v0  ;;  %1058 = vmatprep.subr.bf16.mxu1 %v1543_v2 }
 0x4be   :  { %v781_v54 = vpop.f32.mrf.mxu0  ;;  %v822_v37 = vpop.f32.mrf.mxu1 }
 0x4c0   :  { %v783_v39 = vpop.f32.mrf.mxu0  ;;  %v824_v41 = vpop.f32.mrf.mxu1 }
 0x4c1   :  { %v833_v42 = vcombine.low %v781_v54, %v783_v39  ;;  %v834_v43 = vcombine.low %v822_v37, %v824_v41 }
 0x4c2   :  { %v785_v44 = vpop.f32.mrf.mxu0  ;;  %v826_v45 = vpop.f32.mrf.mxu1 }
 0x4c3   :  { %v841_v46 = vrot.slane %v833_v42, %v1765_v40  ;;  %v848_v48 = vrot.slane %v834_v43, %v1765_v40 }
 0x4c4   :  { %v786_v50 = vpop.f32.mrf.mxu0  ;;  %v827_v0 = vpop.f32.mrf.mxu1 }
 0x4c5   :  { %v849_v51 = vcombine.low %v841_v46, %v848_v48 }
 0x4c7   :  { %v851_v2 = vadd.f32 %v1336_v49, %v849_v51 }
 0x4c9   :  { %v852_v52 = vmul.f32 0.5, %v851_v2  ;;  %v857_v53 = vrot.slane %v851_v2, 2  ;;  %v863_v55 = vrot.slane %v851_v2, 4  ;;  %v866_v56 = vrot.slane %v851_v2, 6  ;;  %v1476_v2 = vld [vmem:[%s2127_s1 + $0xe0] ss:$16 sps:$4 sm:$0xff]  }
 0x4cb   :  { %1434 = vtanh.f32 %v852_v52  ;;  %v859_v38 = vmul.f32 0.5, %v857_v53  ;;  %v868_v57 = vmul.f32 0.5, %v866_v56  ;;  %v1477_v52 = vld [vmem:[%s2127_s1 + $0xe8] ss:$16 sps:$4 sm:$0xff]   ;;  %v1478_v53 = vld [vmem:[%s2127_s1 + $0xc4] ss:$16 sps:$4 sm:$0xff]  }
 0x4cc   :  { %v1481_v56 = vld [vmem:[%s2127_s1 + $0xc8] ss:$16 sps:$4 sm:$0xff]  }
 0x4cd   :  { %1436 = vtanh.f32 %v859_v38  ;;  %v1479_v38 = vld [vmem:[%s2127_s1 + $0xcc] ss:$16 sps:$4 sm:$0xff]  }
 0x4ce   :  { %1438 = vtanh.f32 %v863_v55  ;;  %v1480_v55 = vld [vmem:[%s2127_s1 + $0xc0] ss:$16 sps:$4 sm:$0xff]  }
 0x4cf   :  { %1440 = vtanh.f32 %v868_v57  ;;  %v1482_v57 = vld [vmem:[%s2127_s1 + $0xa4] ss:$16 sps:$4 sm:$0xff]  }
 0x4d8   :  { %v1435_v58 = vpop.eup %1434 }
 0x4d9   :  { %v854_v59 = vadd.f32 1.0, %v1435_v58  ;;  %v1483_v58 = vld [vmem:[%s2127_s1 + $0xac] ss:$16 sps:$4 sm:$0xff]  }
 0x4da   :  { %v1437_v60 = vpop.eup %1436 }
 0x4db   :  { %v855_v47 = vmul.f32 0.5, %v854_v59  ;;  %v861_v62 = vadd.f32 1.0, %v1437_v60  ;;  %v1439_v33 = vpop.eup %1438  ;;  %v1485_v59 = vld [vmem:[%s2127_s1 + $0xa8] ss:$16 sps:$4 sm:$0xff]   ;;  %v1486_v60 = vld [vmem:[%s2127_s1 + $0x84] ss:$16 sps:$4 sm:$0xff]  }
 0x4dc   :  { %v1441_v54 = vpop.eup %1440 }
 0x4dd   :  { %v862_v63 = vmul.f32 0.5, %v861_v62  ;;  %v873_v35 = vmul.f32 %v1439_v33, %v855_v47  ;;  %v870_v37 = vadd.f32 1.0, %v1441_v54  ;;  %v1487_v47 = vld [vmem:[%s2127_s1 + $0x8c] ss:$16 sps:$4 sm:$0xff]   ;;  %v1488_v62 = vld [vmem:[%s2127_s1 + $0x80] ss:$16 sps:$4 sm:$0xff]  }
 0x4de   :  { %v1490_v33 = vld [vmem:[%s2127_s1 + $0x64] ss:$16 sps:$4 sm:$0xff]  }
 0x4df   :  { %v872_v34 = vmul.f32 %v862_v63, %v1910_v61  ;;  %v871_v39 = vmul.f32 0.5, %v870_v37  ;;  %v1489_v63 = vld [vmem:[%s2127_s1 + $0x88] ss:$16 sps:$4 sm:$0xff]   ;;  %v1494_v54 = vld [vmem:[%s2127_s1 + $0x44] ss:$16 sps:$4 sm:$0xff]  }
 0x4e0   :  { %v1495_v37 = vld [vmem:[%s2127_s1 + $0x4c] ss:$16 sps:$4 sm:$0xff]  }
 0x4e1   :  { %v1956_v36 = vadd.f32 %v873_v35, %v872_v34  ;;  %v1491_v34 = vld [vmem:[%s2127_s1 + $0x6c] ss:$16 sps:$4 sm:$0xff]   ;;  %v1492_v35 = vld [vmem:[%s2127_s1 + $0x60] ss:$16 sps:$4 sm:$0xff]  }
 0x4e3   :  { %1442 = vtanh.f32 %v1956_v36 }
 0x4f0   :  { %v1443_v41 = vpop.eup %1442 }
 0x4f1   :  { %v876_v42 = vmul.f32 %v1443_v41, %v871_v39  ;;  %v1496_v39 = vld [vmem:[%s2127_s1 + $0x40] ss:$16 sps:$4 sm:$0xff]   ;;  %v1497_v41 = vld [vmem:[%s2127_s1 + $0x48] ss:$16 sps:$4 sm:$0xff]  }
 0x4f3   :  { %1337 = vst [vmem:[%s2129_s2 + $0x8] sm:$0x3] %v876_v42  ;;  %v881_v43 = vpack.c.bf16 %v876_v42, %v876_v42  ;;  %v1498_v42 = vld [vmem:[%s2127_s1 + $0x24] ss:$16 sps:$4 sm:$0xff]  }
 0x4f5   :  { %915 = vmatmul.mubr.bf16.vlgmr.msra.gmra.mxu0 %v881_v43  ;;  %956 = vmatmul.mubr.bf16.vlgmr.msra.gmra.mxu1 %v881_v43  ;;  %v1499_v43 = vld [vmem:[%s2127_s1 + $0x2c] ss:$16 sps:$4 sm:$0xff]  }
 0x4f6   :  { %1018 = vmatpush1.bf16.msra.mxu0 %v1549_v3  ;;  %1059 = vmatpush1.bf16.msra.mxu1 %v1554_v4  ;;  %v1474_v3 = vld [vmem:[%s2127_s1 + $0xe4] ss:$16 sps:$4 sm:$0xff]   ;;  %v1475_v4 = vld [vmem:[%s2127_s1 + $0xec] ss:$16 sps:$4 sm:$0xff]  }
 0x4f7   :  { %1019 = vmatprep.subr.bf16.mxu0 %v1560_v5  ;;  %1060 = vmatprep.subr.bf16.mxu1 %v1567_v6 }
 0x4f8   :  { %1049 = vmatprep.mubr.bf16.mxu0 %v1506_v1  ;;  %1090 = vmatprep.mubr.bf16.mxu1 %v1506_v1 }
 0x4fa   :  { %1020 = vmatpush1.bf16.msra.mxu0 %v1572_v7  ;;  %1061 = vmatpush1.bf16.msra.mxu1 %v1578_v8 }
 0x4fb   :  { %1021 = vmatprep.subr.bf16.mxu0 %v1584_v9  ;;  %1062 = vmatprep.subr.bf16.mxu1 %v1589_v10 }
 0x4fe   :  { %1022 = vmatpush1.bf16.msra.mxu0 %v1594_v11  ;;  %1063 = vmatpush1.bf16.msra.mxu1 %v1599_v12 }
 0x4ff   :  { %1023 = vmatprep.subr.bf16.mxu0 %v1606_v13  ;;  %1064 = vmatprep.subr.bf16.mxu1 %v1613_v14 }
 0x502   :  { %1024 = vmatpush1.bf16.msra.mxu0 %v1618_v15  ;;  %1065 = vmatpush1.bf16.msra.mxu1 %v1625_v16  ;;  %v1338_v15 = vld [vmem:[%s2128_s0 + $0x28] sm:$0xff] }
 0x503   :  { %1025 = vmatprep.subr.bf16.mxu0 %v1630_v17  ;;  %1066 = vmatprep.subr.bf16.mxu1 %v1637_v18 }
 0x506   :  { %1026 = vmatpush1.bf16.msra.mxu0 %v1642_v19  ;;  %1067 = vmatpush1.bf16.msra.mxu1 %v1647_v20 }
 0x507   :  { %1027 = vmatprep.subr.bf16.mxu0 %v1654_v21  ;;  %1068 = vmatprep.subr.bf16.mxu1 %v1661_v22 }
 0x50a   :  { %1028 = vmatpush1.bf16.msra.mxu0 %v1668_v23  ;;  %1069 = vmatpush1.bf16.msra.mxu1 %v1673_v24 }
 0x50b   :  { %1029 = vmatprep.subr.bf16.mxu0 %v1680_v25  ;;  %1070 = vmatprep.subr.bf16.mxu1 %v1685_v26 }
 0x50e   :  { %1030 = vmatpush1.bf16.msra.mxu0 %v1692_v27  ;;  %1071 = vmatpush1.bf16.msra.mxu1 %v1697_v28 }
 0x50f   :  { %1031 = vmatprep.subr.bf16.mxu0 %v1704_v29  ;;  %1072 = vmatprep.subr.bf16.mxu1 %v1709_v30 }
 0x512   :  { %1032 = vmatpush1.bf16.msra.mxu0 %v1716_v31  ;;  %1073 = vmatpush1.bf16.msra.mxu1 %v1721_v32 }
 0x513   :  { %1152 = vmatprep.subr.bf16.mxu0 %v1474_v3  ;;  %1193 = vmatprep.subr.bf16.mxu1 %v1475_v4  ;;  %v1500_v3 = vld [vmem:[%s2127_s1 + $0x20] ss:$16 sps:$4 sm:$0xff]   ;;  %v1501_v4 = vld [vmem:[%s2127_s1 + $0x28] ss:$16 sps:$4 sm:$0xff]  }
 0x5b5   :  { %v916_v5 = vpop.f32.mrf.mxu0  ;;  %v957_v6 = vpop.f32.mrf.mxu1 }
 0x5b7   :  { %v918_v7 = vpop.f32.mrf.mxu0  ;;  %v959_v8 = vpop.f32.mrf.mxu1 }
 0x5b8   :  { %v968_v9 = vcombine.low %v916_v5, %v918_v7  ;;  %v969_v10 = vcombine.low %v957_v6, %v959_v8  ;;  %v1502_v5 = vld [vmem:[%s2127_s1 + $0x4] ss:$16 sps:$4 sm:$0xff]   ;;  %v1503_v6 = vld [vmem:[%s2127_s1 + $0xc] ss:$16 sps:$4 sm:$0xff]   ;;  %v1504_v7 = vld [vmem:[%s2127_s1] ss:$16 sps:$4 sm:$0xff]  }
 0x5b9   :  { %v920_v11 = vpop.f32.mrf.mxu0  ;;  %v961_v12 = vpop.f32.mrf.mxu1  ;;  %v1505_v8 = vld [vmem:[%s2127_s1 + $0x8] ss:$16 sps:$4 sm:$0xff]  }
 0x5ba   :  { %v976_v13 = vrot.slane %v968_v9, %v1765_v40  ;;  %v983_v14 = vrot.slane %v969_v10, %v1765_v40 }
 0x5bb   :  { %v921_v16 = vpop.f32.mrf.mxu0  ;;  %v962_v17 = vpop.f32.mrf.mxu1 }
 0x5bc   :  { %v984_v18 = vcombine.low %v976_v13, %v983_v14 }
 0x5be   :  { %v986_v19 = vadd.f32 %v1338_v15, %v984_v18 }
 0x5c0   :  { %v987_v20 = vmul.f32 0.5, %v986_v19  ;;  %v992_v21 = vrot.slane %v986_v19, 2  ;;  %v998_v23 = vrot.slane %v986_v19, 4  ;;  %v1001_v24 = vrot.slane %v986_v19, 6  ;;  %v1340_v19 = vld [vmem:[%s2128_s0 + $0x30] sm:$0xff] }
 0x5c2   :  { %1444 = vtanh.f32 %v987_v20  ;;  %v994_v22 = vmul.f32 0.5, %v992_v21  ;;  %v1003_v25 = vmul.f32 0.5, %v1001_v24 }
 0x5c4   :  { %1446 = vtanh.f32 %v994_v22 }
 0x5c5   :  { %1448 = vtanh.f32 %v998_v23 }
 0x5c6   :  { %1450 = vtanh.f32 %v1003_v25 }
 0x5cf   :  { %v1445_v26 = vpop.eup %1444 }
 0x5d0   :  { %v989_v27 = vadd.f32 1.0, %v1445_v26 }
 0x5d1   :  { %v1447_v28 = vpop.eup %1446 }
 0x5d2   :  { %v990_v29 = vmul.f32 0.5, %v989_v27  ;;  %v996_v30 = vadd.f32 1.0, %v1447_v28  ;;  %v1449_v32 = vpop.eup %1448 }
 0x5d3   :  { %v1451_v46 = vpop.eup %1450 }
 0x5d4   :  { %v997_v31 = vmul.f32 0.5, %v996_v30  ;;  %v1008_v44 = vmul.f32 %v1449_v32, %v990_v29  ;;  %v1005_v48 = vadd.f32 1.0, %v1451_v46 }
 0x5d6   :  { %v1007_v61 = vmul.f32 %v997_v31, %v1956_v36  ;;  %v1006_v49 = vmul.f32 0.5, %v1005_v48  ;;  %v1493_v36 = vld [vmem:[%s2127_s1 + $0x68] ss:$16 sps:$4 sm:$0xff]  }
 0x5d8   :  { %v2006_v45 = vadd.f32 %v1008_v44, %v1007_v61 }
 0x5da   :  { %1452 = vtanh.f32 %v2006_v45 }
 0x5e7   :  { %v1453_v50 = vpop.eup %1452 }
 0x5e8   :  { %v1011_v0 = vmul.f32 %v1453_v50, %v1006_v49 }
 0x5ea   :  { %1339 = vst [vmem:[%s2129_s2 + $0xa] sm:$0x3] %v1011_v0  ;;  %v1016_v51 = vpack.c.bf16 %v1011_v0, %v1011_v0 }
 0x5ec   :  { %1050 = vmatmul.mubr.bf16.vlgmr.msra.gmra.mxu0 %v1016_v51  ;;  %1091 = vmatmul.mubr.bf16.vlgmr.msra.gmra.mxu1 %v1016_v51 }
 0x5ed   :  { %1153 = vmatpush1.bf16.msra.mxu0 %v1476_v2  ;;  %1194 = vmatpush1.bf16.msra.mxu1 %v1477_v52 }
 0x5ee   :  { %1154 = vmatprep.subr.bf16.mxu0 %v1478_v53  ;;  %1195 = vmatprep.subr.bf16.mxu1 %v1479_v38 }
 0x5ef   :  { %1184 = vmatprep.mubr.bf16.mxu0 %v1506_v1  ;;  %1225 = vmatprep.mubr.bf16.mxu1 %v1506_v1  ;;  %v1484_v1 = vld [vmem:[%s2127_s1 + $0xa0] ss:$16 sps:$4 sm:$0xff]  }
 0x5f1   :  { %1155 = vmatpush1.bf16.msra.mxu0 %v1480_v55  ;;  %1196 = vmatpush1.bf16.msra.mxu1 %v1481_v56 }
 0x5f2   :  { %1156 = vmatprep.subr.bf16.mxu0 %v1482_v57  ;;  %1197 = vmatprep.subr.bf16.mxu1 %v1483_v58 }
 0x5f5   :  { %1157 = vmatpush1.bf16.msra.mxu0 %v1484_v1  ;;  %1198 = vmatpush1.bf16.msra.mxu1 %v1485_v59 }
 0x5f6   :  { %1158 = vmatprep.subr.bf16.mxu0 %v1486_v60  ;;  %1199 = vmatprep.subr.bf16.mxu1 %v1487_v47 }
 0x5f9   :  { %1159 = vmatpush1.bf16.msra.mxu0 %v1488_v62  ;;  %1200 = vmatpush1.bf16.msra.mxu1 %v1489_v63 }
 0x5fa   :  { %1160 = vmatprep.subr.bf16.mxu0 %v1490_v33  ;;  %1201 = vmatprep.subr.bf16.mxu1 %v1491_v34  ;;  %v1342_v33 = vld [vmem:[%s2128_s0 + $0x38] sm:$0xff] }
 0x5fd   :  { %1161 = vmatpush1.bf16.msra.mxu0 %v1492_v35  ;;  %1202 = vmatpush1.bf16.msra.mxu1 %v1493_v36 }
 0x5fe   :  { %1162 = vmatprep.subr.bf16.mxu0 %v1494_v54  ;;  %1203 = vmatprep.subr.bf16.mxu1 %v1495_v37 }
 0x601   :  { %1163 = vmatpush1.bf16.msra.mxu0 %v1496_v39  ;;  %1204 = vmatpush1.bf16.msra.mxu1 %v1497_v41 }
 0x602   :  { %1164 = vmatprep.subr.bf16.mxu0 %v1498_v42  ;;  %1205 = vmatprep.subr.bf16.mxu1 %v1499_v43 }
 0x605   :  { %1165 = vmatpush1.bf16.msra.mxu0 %v1500_v3  ;;  %1206 = vmatpush1.bf16.msra.mxu1 %v1501_v4 }
 0x606   :  { %1166 = vmatprep.subr.bf16.mxu0 %v1502_v5  ;;  %1207 = vmatprep.subr.bf16.mxu1 %v1503_v6 }
 0x609   :  { %1167 = vmatpush1.bf16.msra.mxu0 %v1504_v7  ;;  %1208 = vmatpush1.bf16.msra.mxu1 %v1505_v8 }
 0x6ac   :  { %v1051_v9 = vpop.f32.mrf.mxu0  ;;  %v1092_v10 = vpop.f32.mrf.mxu1 }
 0x6ae   :  { %v1053_v11 = vpop.f32.mrf.mxu0  ;;  %v1094_v12 = vpop.f32.mrf.mxu1 }
 0x6af   :  { %v1103_v13 = vcombine.low %v1051_v9, %v1053_v11  ;;  %v1104_v14 = vcombine.low %v1092_v10, %v1094_v12 }
 0x6b0   :  { %v1055_v15 = vpop.f32.mrf.mxu0  ;;  %v1096_v16 = vpop.f32.mrf.mxu1 }
 0x6b1   :  { %v1111_v17 = vrot.slane %v1103_v13, %v1765_v40  ;;  %v1118_v18 = vrot.slane %v1104_v14, %v1765_v40 }
 0x6b2   :  { %v1056_v20 = vpop.f32.mrf.mxu0  ;;  %v1097_v21 = vpop.f32.mrf.mxu1 }
 0x6b3   :  { %v1119_v22 = vcombine.low %v1111_v17, %v1118_v18 }
 0x6b5   :  { %v1121_v23 = vadd.f32 %v1340_v19, %v1119_v22 }
 0x6b7   :  { %v1122_v24 = vmul.f32 0.5, %v1121_v23  ;;  %v1127_v25 = vrot.slane %v1121_v23, 2  ;;  %v1133_v27 = vrot.slane %v1121_v23, 4  ;;  %v1136_v28 = vrot.slane %v1121_v23, 6 }
 0x6b9   :  { %1454 = vtanh.f32 %v1122_v24  ;;  %v1129_v26 = vmul.f32 0.5, %v1127_v25  ;;  %v1138_v29 = vmul.f32 0.5, %v1136_v28 }
 0x6bb   :  { %1456 = vtanh.f32 %v1129_v26 }
 0x6bc   :  { %1458 = vtanh.f32 %v1133_v27 }
 0x6bd   :  { %1460 = vtanh.f32 %v1138_v29 }
 0x6c6   :  { %v1455_v30 = vpop.eup %1454 }
 0x6c7   :  { %v1124_v31 = vadd.f32 1.0, %v1455_v30 }
 0x6c8   :  { %v1457_v32 = vpop.eup %1456 }
 0x6c9   :  { %v1125_v61 = vmul.f32 0.5, %v1124_v31  ;;  %v1131_v44 = vadd.f32 1.0, %v1457_v32  ;;  %v1459_v48 = vpop.eup %1458 }
 0x6ca   :  { %v1461_v51 = vpop.eup %1460 }
 0x6cb   :  { %v1132_v46 = vmul.f32 0.5, %v1131_v44  ;;  %v1143_v50 = vmul.f32 %v1459_v48, %v1125_v61  ;;  %v1140_v2 = vadd.f32 1.0, %v1461_v51 }
 0x6cd   :  { %v1142_v49 = vmul.f32 %v1132_v46, %v2006_v45  ;;  %v1141_v52 = vmul.f32 0.5, %v1140_v2 }
 0x6cf   :  { %v1144_v0 = vadd.f32 %v1143_v50, %v1142_v49 }
 0x6d1   :  { %1462 = vtanh.f32 %v1144_v0 }
 0x6de   :  { %v1463_v53 = vpop.eup %1462 }
 0x6df   :  { %v1146_v38 = vmul.f32 %v1463_v53, %v1141_v52 }
 0x6e1   :  { %1341 = vst [vmem:[%s2129_s2 + $0xc] sm:$0x3] %v1146_v38  ;;  %v1151_v55 = vpack.c.bf16 %v1146_v38, %v1146_v38 }
 0x6e3   :  { %1185 = vmatmul.mubr.bf16.vlgmr.msra.gmra.mxu0 %v1151_v55  ;;  %1226 = vmatmul.mubr.bf16.vlgmr.msra.gmra.mxu1 %v1151_v55 }
 0x7a3   :  { %v1186_v56 = vpop.f32.mrf.mxu0  ;;  %v1227_v57 = vpop.f32.mrf.mxu1 }
 0x7a5   :  { %v1188_v58 = vpop.f32.mrf.mxu0  ;;  %v1229_v1 = vpop.f32.mrf.mxu1 }
 0x7a6   :  { %v1238_v45 = vcombine.low %v1186_v56, %v1188_v58  ;;  %v1239_v59 = vcombine.low %v1227_v57, %v1229_v1 }
 0x7a7   :  { %v1190_v60 = vpop.f32.mrf.mxu0  ;;  %v1231_v47 = vpop.f32.mrf.mxu1 }
 0x7a8   :  { %v1246_v62 = vrot.slane %v1238_v45, %v1765_v40  ;;  %v1253_v63 = vrot.slane %v1239_v59, %v1765_v40 }
 0x7a9   :  { %v1191_v34 = vpop.f32.mrf.mxu0  ;;  %v1232_v35 = vpop.f32.mrf.mxu1 }
 0x7aa   :  { %v1254_v36 = vcombine.low %v1246_v62, %v1253_v63 }
 0x7ac   :  { %v1256_v54 = vadd.f32 %v1342_v33, %v1254_v36 }
 0x7ae   :  { %v1257_v37 = vmul.f32 0.5, %v1256_v54  ;;  %v1262_v39 = vrot.slane %v1256_v54, 2  ;;  %v1268_v42 = vrot.slane %v1256_v54, 4  ;;  %v1271_v43 = vrot.slane %v1256_v54, 6 }
 0x7b0   :  { %1464 = vtanh.f32 %v1257_v37  ;;  %v1264_v41 = vmul.f32 0.5, %v1262_v39  ;;  %v1273_v3 = vmul.f32 0.5, %v1271_v43 }
 0x7b2   :  { %1466 = vtanh.f32 %v1264_v41 }
 0x7b3   :  { %1468 = vtanh.f32 %v1268_v42 }
 0x7b4   :  { %1470 = vtanh.f32 %v1273_v3 }
 0x7bd   :  { %v1465_v4 = vpop.eup %1464 }
 0x7be   :  { %v1259_v5 = vadd.f32 1.0, %v1465_v4 }
 0x7bf   :  { %v1467_v40 = vpop.eup %1466 }
 0x7c0   :  { %v1260_v6 = vmul.f32 0.5, %v1259_v5  ;;  %v1266_v7 = vadd.f32 1.0, %v1467_v40  ;;  %v1469_v9 = vpop.eup %1468 }
 0x7c1   :  { %v1471_v13 = vpop.eup %1470 }
 0x7c2   :  { %v1267_v8 = vmul.f32 0.5, %v1266_v7  ;;  %v1278_v11 = vmul.f32 %v1469_v9, %v1260_v6  ;;  %v1275_v14 = vadd.f32 1.0, %v1471_v13 }
 0x7c4   :  { %v1277_v10 = vmul.f32 %v1267_v8, %v1144_v0  ;;  %v1276_v15 = vmul.f32 0.5, %v1275_v14 }
 0x7c6   :  { %v1279_v12 = vadd.f32 %v1278_v11, %v1277_v10 }
 0x7c8   :  { %1472 = vtanh.f32 %v1279_v12  ;;  %1285 = vst [vmem:[%s2130_s4] sm:$0x3] %v1279_v12 }
 0x7d5   :  { %v1473_v16 = vpop.eup %1472 }
 0x7d6   :  { %v1281_v17 = vmul.f32 %v1473_v16, %v1276_v15 }
 0x7d8   :  { %1343 = vst [vmem:[%s2129_s2 + $0xe] sm:$0x3] %v1281_v17  ;;  %1284 = vst [vmem:[%s2131_s3] sm:$0x3] %v1281_v17 }

</bundles_post_ra>
